<compile_context>
chip_gen: v5e
topology: v5e:2x2
jax: 0.10.0
libtpu: 0.0.40
codegen_flags: <defaults>
</compile_context>

<pallas_src>
import math
import jax
import jax.numpy as jnp
from jax.experimental import pallas as pl
from jax.experimental.pallas import tpu as pltpu

_INV_SQRT2 = 1.0 / math.sqrt(2.0)
_LN_EPS = 1e-12


def matching_linear_kernel(x_ref, w1_ref, b1_ref, red_ref, invh_ref, beff_ref,
                           o_ref):
    # --- dense: [tm, D] @ [D, H] + [1, H]  (MXU, f32 accumulate) ---
    h = jnp.dot(x_ref[...], w1_ref[...],
                preferred_element_type=jnp.float32) + b1_ref[...]

    # --- exact (erf-based) gelu, matching torch.erf semantics ---
    g = h * 0.5 * (1.0 + jax.lax.erf(h * _INV_SQRT2))

    # --- fused LayerNorm + decoder -------------------------------------
    # H-reductions as trans-B matvecs on the MXU; results land directly in
    # the lane-dense (rows -> lanes) output layout:
    #   stats[0] = mean_h g                    (mu)
    #   stats[1] = sum_h g * w_cent            (decoder sum, mean-centered)
    stats = jax.lax.dot_general(
        red_ref[...], g,
        dimension_numbers=(((1,), (1,)), ((), ())),
        preferred_element_type=jnp.float32)                   # (2, tm)
    eg2 = jax.lax.dot_general(
        invh_ref[...], g * g,
        dimension_numbers=(((1,), (1,)), ((), ())),
        preferred_element_type=jnp.float32)                   # (1, tm)

    mu = stats[0:1, :]
    s = stats[1:2, :]
    var = eg2 - mu * mu                                       # biased variance
    y = s * jax.lax.rsqrt(var + _LN_EPS) + beff_ref[0]        # (1, tm) scalars
    o_ref[...] = y.astype(o_ref.dtype)


def _pick_tile(n, tm):
    """Row tile: multiple of 128 (unmasked lane-dense output writes); shrink
    for small N so the v7x megacore gets several tiles.  Large N keeps the
    big tile (amortizes ~0.35 us/step grid overhead, big x DMAs)."""
    tm = max(128, (tm // 128) * 128)
    while tm > 256 and pl.cdiv(n, tm) < 4:
        tm //= 2
    while tm > 128 and pl.cdiv(n, tm) < 2:
        tm //= 2
    return tm


def matching_linear(x, w_dense, b_dense, ln_w, ln_b, w_dec, b_dec, *, tm=1024):
    """x: [B, S, D] float32.  Returns [B, S] (decoder output squeezed)."""
    B, S, D = x.shape
    H = w_dense.shape[0]                      # nn.Linear weight is [out, in]
    N = B * S
    tm = _pick_tile(N, tm)
    num_tiles = pl.cdiv(N, tm)                # ragged tail handled by Pallas

    xf = x.reshape(N, D)                      # view; no pad / extra HBM copy

    w1 = jnp.transpose(w_dense)               # [D, H]
    b1 = b_dense.reshape(1, H)

    # Algebraic fold of the LN affine and the 1-wide decoder (see header).
    w_dec_row = w_dec.reshape(H)
    w_eff = ln_w * w_dec_row
    w_cent = w_eff - jnp.mean(w_eff)          # folds the "- mu * sum(w_eff)" term
    inv_h = jnp.full((1, H), 1.0 / H, dtype=jnp.float32)
    red = jnp.concatenate([inv_h, w_cent.reshape(1, H)], axis=0)   # (2, H)
    b_eff = (jnp.dot(ln_b, w_dec_row) + b_dec[0]).reshape(1)       # scalar -> SMEM

    out = pl.pallas_call(
        matching_linear_kernel,
        out_shape=jax.ShapeDtypeStruct((1, N), x.dtype),
        grid_spec=pltpu.PrefetchScalarGridSpec(
            num_scalar_prefetch=0,
            grid=(num_tiles,),
            in_specs=[
                pl.BlockSpec((tm, D), lambda i: (i, 0)),   # x rows (streamed)
                pl.BlockSpec((D, H), lambda i: (0, 0)),    # dense weight (resident)
                pl.BlockSpec((1, H), lambda i: (0, 0)),    # dense bias
                pl.BlockSpec((2, H), lambda i: (0, 0)),    # [1/H ; w_cent] rows
                pl.BlockSpec((1, H), lambda i: (0, 0)),    # 1/H row for E[g^2]
                pl.BlockSpec(memory_space=pltpu.MemorySpace.SMEM),  # b_eff
            ],
            # Lane-dense output: each grid step writes a (1, tm) row slab; the
            # last (partial) slab is masked by Pallas when N % tm != 0.
            out_specs=pl.BlockSpec((1, tm), lambda i: (0, i)),
        ),
        compiler_params=pltpu.CompilerParams(
            dimension_semantics=("parallel",)),
    )(xf, w1, b1, red, inv_h, b_eff)

    return out.reshape(B, S)


def reference(x, w_dense, b_dense, ln_w, ln_b, w_dec, b_dec):
    h = jnp.einsum("bsd,hd->bsh", x, w_dense) + b_dense
    g = h * 0.5 * (1.0 + jax.lax.erf(h / math.sqrt(2.0)))
    mu = jnp.mean(g, axis=-1, keepdims=True)
    var = jnp.mean((g - mu) ** 2, axis=-1, keepdims=True)
    gn = (g - mu) / jnp.sqrt(var + 1e-12) * ln_w + ln_b
    y = jnp.einsum("bsh,oh->bso", gn, w_dec) + b_dec
    return y[..., 0]


if __name__ == "__main__":
    # Module defaults: input_size=192 -> hidden_size = 192*2//3 = 128, outputdim=1
    B, S, D = 2, 8, 192
    H = D * 2 // 3
    O = 1

    key = jax.random.PRNGKey(0)
    k_x, k_w1, k_b1, k_w2, k_b2, k_lw, k_lb, k_x2 = jax.random.split(key, 8)

    x = jax.random.normal(k_x, (B, S, D), dtype=jnp.float32)

    # Deterministic synthetic parameters (nn.Linear shapes: [out, in]).
    w_dense = jax.random.normal(k_w1, (H, D), dtype=jnp.float32) * (1.0 / math.sqrt(D))
    b_dense = jax.random.normal(k_b1, (H,), dtype=jnp.float32) * 0.01
    ln_w = 1.0 + 0.1 * jax.random.normal(k_lw, (H,), dtype=jnp.float32)
    ln_b = 0.1 * jax.random.normal(k_lb, (H,), dtype=jnp.float32)
    w_dec = jax.random.normal(k_w2, (O, H), dtype=jnp.float32) * (1.0 / math.sqrt(H))
    b_dec = jax.random.normal(k_b2, (O,), dtype=jnp.float32) * 0.01

    # Small-shape run: N = 16 rows -> a single (partial) 128-row tile.
    out = matching_linear(x, w_dense, b_dense, ln_w, ln_b, w_dec, b_dec)
    out = jax.block_until_ready(out)
    ref = reference(x, w_dense, b_dense, ln_w, ln_b, w_dec, b_dec)
    assert out.shape == (B, S), out.shape
    err = float(jnp.max(jnp.abs(out - ref)))
    assert jnp.allclose(out, ref, atol=1e-4, rtol=1e-4), err

    # Multi-tile ragged run (N = 1200 -> 256-row tiles, last tile partial),
    # exercising the no-pad partial-block path on input and output.
    B2, S2 = 3, 400
    x2 = jax.random.normal(k_x2, (B2, S2, D), dtype=jnp.float32)
    out2 = matching_linear(x2, w_dense, b_dense, ln_w, ln_b, w_dec, b_dec)
    out2 = jax.block_until_ready(out2)
    ref2 = reference(x2, w_dense, b_dense, ln_w, ln_b, w_dec, b_dec)
    assert out2.shape == (B2, S2), out2.shape
    err2 = float(jnp.max(jnp.abs(out2 - ref2)))
    assert jnp.allclose(out2, ref2, atol=1e-4, rtol=1e-4), err2

    print("KERNEL_OK")
</pallas_src>

<mosaic_0001>
module attributes {stable_mosaic.version = 11 : i64} {
  func.func @matching_linear_kernel(%arg0: i32, %arg1: memref<128x192xf32, #tpu.memory_space<vmem>>, %arg2: memref<192x128xf32, #tpu.memory_space<vmem>>, %arg3: memref<1x128xf32, #tpu.memory_space<vmem>>, %arg4: memref<2x128xf32, #tpu.memory_space<vmem>>, %arg5: memref<1x128xf32, #tpu.memory_space<vmem>>, %arg6: memref<1xf32, #tpu.memory_space<smem>>, %arg7: memref<1x128xf32, #tpu.memory_space<vmem>>) attributes {dimension_semantics = [#tpu.dimension_semantics<parallel>], iteration_bounds = array<i64: 1>, scalar_prefetch = 0 : i64, scratch_operands = 0 : i64, tpu.core_type = #tpu.core_type<tc>, window_params = [{transform_indices = @transform_0, window_bounds = array<i64: 128, 192>}, {pipeline_mode = #tpu.pipeline_mode<synchronous>, transform_indices = @transform_1, window_bounds = array<i64: 192, 128>}, {pipeline_mode = #tpu.pipeline_mode<synchronous>, transform_indices = @transform_2, window_bounds = array<i64: 1, 128>}, {pipeline_mode = #tpu.pipeline_mode<synchronous>, transform_indices = @transform_3, window_bounds = array<i64: 2, 128>}, {pipeline_mode = #tpu.pipeline_mode<synchronous>, transform_indices = @transform_4, window_bounds = array<i64: 1, 128>}, {transform_indices = @transform_5, window_bounds = array<i64: 1>}, {transform_indices = @transform_6, window_bounds = array<i64: 1, 128>}]} {
    %c0 = arith.constant 0 : index
    %c0_0 = arith.constant 0 : index
    %0 = vector.load %arg1[%c0, %c0_0] : memref<128x192xf32, #tpu.memory_space<vmem>>, vector<128x192xf32>
    %c0_1 = arith.constant 0 : index
    %c0_2 = arith.constant 0 : index
    %1 = vector.load %arg2[%c0_1, %c0_2] : memref<192x128xf32, #tpu.memory_space<vmem>>, vector<192x128xf32>
    %cst = arith.constant dense<0.000000e+00> : vector<128x128xf32>
    %2 = tpu.matmul %0, %1, %cst {dimension_numbers = #tpu.dot_dimension_numbers<[1], [0], [0], [1], [0, 0, 1, 1], [], []>} : vector<128x192xf32>, vector<192x128xf32>, vector<128x128xf32> -> vector<128x128xf32>
    %c0_3 = arith.constant 0 : index
    %c0_4 = arith.constant 0 : index
    %3 = vector.load %arg3[%c0_3, %c0_4] : memref<1x128xf32, #tpu.memory_space<vmem>>, vector<1x128xf32>
    %4 = vector.broadcast %3 : vector<1x128xf32> to vector<128x128xf32>
    %5 = arith.addf %2, %4 : vector<128x128xf32>
    %cst_5 = arith.constant 5.000000e-01 : f32
    %6 = vector.broadcast %cst_5 : f32 to vector<128x128xf32>
    %7 = arith.mulf %5, %6 : vector<128x128xf32>
    %cst_6 = arith.constant 0.707106769 : f32
    %8 = vector.broadcast %cst_6 : f32 to vector<128x128xf32>
    %9 = arith.mulf %5, %8 : vector<128x128xf32>
    %10 = math.erf %9 : vector<128x128xf32>
    %cst_7 = arith.constant 1.000000e+00 : f32
    %11 = vector.broadcast %cst_7 : f32 to vector<128x128xf32>
    %12 = arith.addf %11, %10 : vector<128x128xf32>
    %13 = arith.mulf %7, %12 : vector<128x128xf32>
    %c0_8 = arith.constant 0 : index
    %c0_9 = arith.constant 0 : index
    %14 = vector.load %arg4[%c0_8, %c0_9] : memref<2x128xf32, #tpu.memory_space<vmem>>, vector<2x128xf32>
    %cst_10 = arith.constant dense<0.000000e+00> : vector<2x128xf32>
    %15 = tpu.matmul %14, %13, %cst_10 {dimension_numbers = #tpu.dot_dimension_numbers<[1], [1], [0], [0], [0, 0, 1, 0], [], []>} : vector<2x128xf32>, vector<128x128xf32>, vector<2x128xf32> -> vector<2x128xf32>
    %c0_11 = arith.constant 0 : index
    %c0_12 = arith.constant 0 : index
    %16 = vector.load %arg5[%c0_11, %c0_12] : memref<1x128xf32, #tpu.memory_space<vmem>>, vector<1x128xf32>
    %17 = arith.mulf %13, %13 : vector<128x128xf32>
    %cst_13 = arith.constant dense<0.000000e+00> : vector<1x128xf32>
    %18 = tpu.matmul %16, %17, %cst_13 {dimension_numbers = #tpu.dot_dimension_numbers<[1], [1], [0], [0], [0, 0, 1, 0], [], []>} : vector<1x128xf32>, vector<128x128xf32>, vector<1x128xf32> -> vector<1x128xf32>
    %19 = vector.extract_strided_slice %15 {offsets = [0, 0], sizes = [1, 128], strides = [1, 1]} : vector<2x128xf32> to vector<1x128xf32>
    %20 = vector.extract_strided_slice %15 {offsets = [1, 0], sizes = [1, 128], strides = [1, 1]} : vector<2x128xf32> to vector<1x128xf32>
    %21 = arith.mulf %19, %19 : vector<1x128xf32>
    %22 = arith.subf %18, %21 : vector<1x128xf32>
    %cst_14 = arith.constant 9.99999996E-13 : f32
    %23 = vector.broadcast %cst_14 : f32 to vector<1x128xf32>
    %24 = arith.addf %22, %23 : vector<1x128xf32>
    %25 = math.rsqrt %24 : vector<1x128xf32>
    %26 = arith.mulf %20, %25 : vector<1x128xf32>
    %c0_15 = arith.constant 0 : index
    %27 = memref.load %arg6[%c0_15] : memref<1xf32, #tpu.memory_space<smem>>
    %28 = vector.broadcast %27 : f32 to vector<1x128xf32>
    %29 = arith.addf %26, %28 : vector<1x128xf32>
    %c0_16 = arith.constant 0 : index
    %c0_17 = arith.constant 0 : index
    %30 = vector.load %arg7[%c0_16, %c0_17] : memref<1x128xf32, #tpu.memory_space<vmem>>, vector<1x128xf32>
    tpu.vector_store %arg7[%c0_16, %c0_17], %29 {strides = array<i32>} : memref<1x128xf32, #tpu.memory_space<vmem>>, vector<1x128xf32>,
    return
  }
  func.func @transform_0(%arg0: i32) -> (i32, i32) {
    %c0_i32 = arith.constant 0 : i32
    %c0_i32_0 = arith.constant 0 : i32
    return %arg0, %c0_i32 : i32, i32
  }
  func.func @transform_1(%arg0: i32) -> (i32, i32) {
    %c0_i32 = arith.constant 0 : i32
    %c0_i32_0 = arith.constant 0 : i32
    %c0_i32_1 = arith.constant 0 : i32
    return %c0_i32, %c0_i32_0 : i32, i32
  }
  func.func @transform_2(%arg0: i32) -> (i32, i32) {
    %c0_i32 = arith.constant 0 : i32
    %c0_i32_0 = arith.constant 0 : i32
    %c0_i32_1 = arith.constant 0 : i32
    return %c0_i32, %c0_i32_0 : i32, i32
  }
  func.func @transform_3(%arg0: i32) -> (i32, i32) {
    %c0_i32 = arith.constant 0 : i32
    %c0_i32_0 = arith.constant 0 : i32
    %c0_i32_1 = arith.constant 0 : i32
    return %c0_i32, %c0_i32_0 : i32, i32
  }
  func.func @transform_4(%arg0: i32) -> (i32, i32) {
    %c0_i32 = arith.constant 0 : i32
    %c0_i32_0 = arith.constant 0 : i32
    %c0_i32_1 = arith.constant 0 : i32
    return %c0_i32, %c0_i32_0 : i32, i32
  }
  func.func @transform_5(%arg0: i32) -> i32 {
    %c0_i32 = arith.constant 0 : i32
    %c0_i32_0 = arith.constant 0 : i32
    return %c0_i32 : i32
  }
  func.func @transform_6(%arg0: i32) -> (i32, i32) {
    %c0_i32 = arith.constant 0 : i32
    %c0_i32_0 = arith.constant 0 : i32
    return %c0_i32, %arg0 : i32, i32
  }
}

</mosaic_0001>

<bundles_post_ra>
// kernel: tpu_custom_call.1
= control target key start
LH: loop header
LB: loop body
LE: loop exit
PB: predicated region body
PF: predicated region fallthrough
CT: control target
= control target key end

     0   :  { %12 = vsyncpa [#allocation4], 0  ;;  %s2027_s0 = inlined_call_operand.hbm [shape: f32[16,192], index: 0, kind: input, shape index: {}]   ;;  %s2028_s1 = inlined_call_operand.hbm [shape: f32[192,128], index: 1, kind: input, shape index: {}]   ;;  %s2029_s2 = inlined_call_operand.vmem [shape: f32[1,128], index: 2, kind: input, shape index: {}]   ;;  %s2030_s3 = inlined_call_operand.vmem [shape: f32[2,128], index: 3, kind: input, shape index: {}]   ;;  %s2031_s4 = inlined_call_operand.vmem [shape: f32[1,128], index: 4, kind: input, shape index: {}]   ;;  %s2032_s5 = inlined_call_operand.<no memory space> [shape: f32[1], index: 5, kind: input, shape index: {}]   ;;  %s2033_s6 = inlined_call_operand.hbm [shape: f32[1,16], index: 6, kind: output, shape index: {}]  }
   0x1   :  { %13 = vsyncpa [#allocation7], 0 }
   0x2   :  { %14 = vsyncpa [#allocation5], 0 }
   0x3   :  { %18 = vsyncadd [#allocation4], 3584  ;;  %s19_s23 = sshll.u32 %s2027_s0, 4  ;;  %s1249_s24 = smov [#allocation3]   ;;  %s20_s23 = int_to_ptr.hbm [resolvable:$true] %s19_s23 }
   0x4   :  { %s21_s25 = sshll.u32 %s1249_s24, 4  ;;  %s32_s28 = sshll.u32 %s2028_s1, 4  ;;  %s22_s25 = int_to_ptr.vmem [resolvable:$true] %s21_s25  ;;  %s33_s28 = int_to_ptr.hbm [resolvable:$true] %s32_s28 }
   0x5   :  { %s1250_s29 = smov 256   ;;  %s1251_s30 = smov 16  }
   0x6   :  { %27 = dma.hbm_to_vmem [thread:$0]  %s20_s23, 512, %s22_s25, [#allocation4], %s1250_s29, %s1250_s29, %s1251_s30  }
   0x7   :  { %s1252_s7 = smov [#allocation6]   ;;  %s1253_s9 = smov 128  }
   0x8   :  { %s34_s8 = sshll.u32 %s1252_s7, 4  ;;  %s1254_s10 = smov 8   ;;  %s35_s8 = int_to_ptr.vmem [resolvable:$true] %s34_s8 }
   0x9   :  { %40 = dma.hbm_to_vmem [thread:$0]  %s33_s28, 3072, %s35_s8, [#allocation7], %s1253_s9, %s1253_s9, %s1254_s10  }
   0xa   :  { %1243 = dma.done.wait [#allocation4], 4096  }
   0xb   :  { %1244 = vsyncadd [#allocation4], 4294963200 }
   0xc   :  { %1245 = dma.done.wait [#allocation7], 3072  }
   0xd   :  { %1246 = vsyncadd [#allocation7], 4294964224  ;;  %v104_v0 = vld [vmem:[#allocation6 + $0x78] sm:$0xff]  ;;  %v103_v1 = vld [vmem:[#allocation6 + $0x70] sm:$0xff]  ;;  %vm117_vm0 = vcmask 523264   ;;  %s1255_s14 = smov [#allocation8]  }
   0xe   :  { %166 = vmatpush.msra.mxu0 %v104_v0  ;;  %v102_v2 = vld [vmem:[#allocation6 + $0x68] sm:$0xff]  ;;  %v112_v3 = vld [vmem:[#allocation6 + $0xb8] sm:$0xff]  ;;  %v101_v4 = vld [vmem:[#allocation6 + $0x60] sm:$0xff]  ;;  %s1084_s15 = sshll.u32 %s1255_s14, 4  ;;  %s1086_s18 = sshll.u32 %s2033_s6, 4  ;;  %s1085_s15 = int_to_ptr.vmem [resolvable:$true] %s1084_s15  ;;  %s1087_s18 = int_to_ptr.hbm [resolvable:$true] %s1086_s18 }
   0xf   :  { %239 = vmatpush.msra.mxu1 %v112_v3  ;;  %v111_v5 = vld [vmem:[#allocation6 + $0xb0] sm:$0xff]  ;;  %v110_v6 = vld [vmem:[#allocation6 + $0xa8] sm:$0xff]  ;;  %v100_v7 = vld [vmem:[#allocation6 + $0x58] sm:$0xff] }
  0x10   :  { %167 = vmatpush.msra.mxu0 %v103_v1  ;;  %v109_v8 = vld [vmem:[#allocation6 + $0xa0] sm:$0xff]  ;;  %v99_v9 = vld [vmem:[#allocation6 + $0x50] sm:$0xff]  ;;  %v108_v10 = vld [vmem:[#allocation6 + $0x98] sm:$0xff] }
  0x11   :  { %240 = vmatpush.msra.mxu1 %v111_v5  ;;  %v98_v11 = vld [vmem:[#allocation6 + $0x48] sm:$0xff]  ;;  %v107_v12 = vld [vmem:[#allocation6 + $0x90] sm:$0xff]  ;;  %v97_v13 = vld [vmem:[#allocation6 + $0x40] sm:$0xff] }
  0x12   :  { %168 = vmatpush.msra.mxu0 %v102_v2  ;;  %v106_v14 = vld [vmem:[#allocation6 + $0x88] sm:$0xff]  ;;  %v96_v15 = vld [vmem:[#allocation6 + $0x38] sm:$0xff]  ;;  %v105_v16 = vld [vmem:[#allocation6 + $0x80] sm:$0xff] }
  0x13   :  { %241 = vmatpush.msra.mxu1 %v110_v6  ;;  %v95_v17 = vld [vmem:[#allocation6 + $0x30] sm:$0xff]  ;;  %v58_v18 = vld [vmem:[#allocation3 + $0x8] sm:$0xff]  ;;  %v93_v20 = vld [vmem:[#allocation6 + $0x20] sm:$0xff] }
  0x14   :  { %169 = vmatpush.msra.mxu0 %v101_v4  ;;  %v94_v19 = vld [vmem:[#allocation6 + $0x28] sm:$0xff]  ;;  %v92_v21 = vld [vmem:[#allocation6 + $0x18] sm:$0xff]  ;;  %v91_v22 = vld [vmem:[#allocation6 + $0x10] sm:$0xff] }
  0x15   :  { %242 = vmatpush.msra.mxu1 %v109_v8  ;;  %v60_v23 = vld [vmem:[#allocation3 + $0x18] sm:$0xff]  ;;  %v90_v24 = vld [vmem:[#allocation6 + $0x8] sm:$0xff]  ;;  %v89_v25 = vld [vmem:[#allocation6] sm:$0xff] }
  0x16   :  { %170 = vmatpush.msra.mxu0 %v100_v7  ;;  %v57_v26 = vld [vmem:[#allocation3] sm:$0xff]  ;;  %v62_v27 = vld [vmem:[#allocation3 + $0x28] sm:$0xff]  ;;  %v59_v28 = vld [vmem:[#allocation3 + $0x10] sm:$0xff] }
  0x17   :  { %243 = vmatpush.msra.mxu1 %v108_v10  ;;  %v64_v29 = vld [vmem:[#allocation3 + $0x38] sm:$0xff]  ;;  %v61_v30 = vld [vmem:[#allocation3 + $0x20] sm:$0xff]  ;;  %v66_v31 = vld [vmem:[#allocation3 + $0x48] sm:$0xff] }
  0x18   :  { %171 = vmatpush.msra.mxu0 %v99_v9  ;;  %v63_v32 = vld [vmem:[#allocation3 + $0x30] sm:$0xff]  ;;  %v68_v33 = vld [vmem:[#allocation3 + $0x58] sm:$0xff]  ;;  %v65_v34 = vld [vmem:[#allocation3 + $0x40] sm:$0xff] }
  0x19   :  { %244 = vmatpush.msra.mxu1 %v107_v12  ;;  %v70_v35 = vld [vmem:[#allocation3 + $0x68] sm:$0xff]  ;;  %v67_v36 = vld [vmem:[#allocation3 + $0x50] sm:$0xff]  ;;  %v72_v37 = vld [vmem:[#allocation3 + $0x78] sm:$0xff] }
  0x1a   :  { %172 = vmatpush.msra.mxu0 %v98_v11  ;;  %v69_v38 = vld [vmem:[#allocation3 + $0x60] sm:$0xff]  ;;  %v74_v39 = vld [vmem:[#allocation3 + $0x88] sm:$0xff]  ;;  %v71_v40 = vld [vmem:[#allocation3 + $0x70] sm:$0xff] }
  0x1b   :  { %245 = vmatpush.msra.mxu1 %v106_v14  ;;  %v76_v41 = vld [vmem:[#allocation3 + $0x98] sm:$0xff]  ;;  %v73_v42 = vld [vmem:[#allocation3 + $0x80] sm:$0xff]  ;;  %v78_v43 = vld [vmem:[#allocation3 + $0xa8] sm:$0xff] }
  0x1c   :  { %173 = vmatpush.msra.mxu0 %v97_v13  ;;  %v75_v44 = vld [vmem:[#allocation3 + $0x90] sm:$0xff]  ;;  %v80_v45 = vld [vmem:[#allocation3 + $0xb8] sm:$0xff]  ;;  %v77_v46 = vld [vmem:[#allocation3 + $0xa0] sm:$0xff] }
  0x1d   :  { %246 = vmatpush.msra.mxu1 %v105_v16  ;;  %v82_v47 = vld [vmem:[#allocation3 + $0xc8] sm:$0xff]  ;;  %v79_v48 = vld [vmem:[#allocation3 + $0xb0] sm:$0xff]  ;;  %v84_v49 = vld [vmem:[#allocation3 + $0xd8] sm:$0xff] }
  0x1e   :  { %174 = vmatpush.msra.mxu0 %v96_v15  ;;  %1097 = vmatmul.msk.f32.vlgmr.msra.gmra.mxu1 %vm117_vm0, %v58_v18  ;;  %v81_v50 = vld [vmem:[#allocation3 + $0xc0] sm:$0xff]  ;;  %v86_v51 = vld [vmem:[#allocation3 + $0xe8] sm:$0xff]  ;;  %v83_v52 = vld [vmem:[#allocation3 + $0xd0] sm:$0xff] }
  0x1f   :  { %v88_v53 = vld [vmem:[#allocation3 + $0xf8] sm:$0xff]  ;;  %v85_v54 = vld [vmem:[#allocation3 + $0xe0] sm:$0xff]  ;;  %v87_v56 = vld [vmem:[#allocation3 + $0xf0] sm:$0xff] }
  0x20   :  { %175 = vmatpush.msra.mxu0 %v95_v17  ;;  %v1316_v58 = vld [vmem:[%s2029_s2] ss:$0 sm:$0xff] }
  0x22   :  { %176 = vmatpush.msra.mxu0 %v94_v19 }
  0x24   :  { %177 = vmatpush.msra.mxu0 %v93_v20 }
  0x26   :  { %178 = vmatpush.msra.mxu0 %v92_v21  ;;  %1098 = vmatmul.msk.f32.gmra.mxu1 %vm117_vm0, %v60_v23 }
  0x28   :  { %179 = vmatpush.msra.mxu0 %v91_v22 }
  0x2a   :  { %180 = vmatpush.msra.mxu0 %v90_v24 }
  0x2c   :  { %181 = vmatpush.msra.mxu0 %v89_v25 }
  0x2d   :  { %182 = vmatmul.f32.vlgmr.msra.gmra.mxu0 %v57_v26 }
  0x2e   :  { %1099 = vmatmul.msk.f32.gmra.mxu1 %vm117_vm0, %v62_v27 }
  0x35   :  { %185 = vmatmul.f32.gmra.mxu0 %v59_v28 }
  0x36   :  { %1100 = vmatmul.msk.f32.gmra.mxu1 %vm117_vm0, %v64_v29 }
  0x3d   :  { %188 = vmatmul.f32.gmra.mxu0 %v61_v30 }
  0x3e   :  { %1101 = vmatmul.msk.f32.gmra.mxu1 %vm117_vm0, %v66_v31 }
  0x45   :  { %191 = vmatmul.f32.gmra.mxu0 %v63_v32 }
  0x46   :  { %1102 = vmatmul.msk.f32.gmra.mxu1 %vm117_vm0, %v68_v33 }
  0x4d   :  { %194 = vmatmul.f32.gmra.mxu0 %v65_v34 }
  0x4e   :  { %1103 = vmatmul.msk.f32.gmra.mxu1 %vm117_vm0, %v70_v35 }
  0x55   :  { %197 = vmatmul.f32.gmra.mxu0 %v67_v36 }
  0x56   :  { %1104 = vmatmul.msk.f32.gmra.mxu1 %vm117_vm0, %v72_v37 }
  0x5d   :  { %200 = vmatmul.f32.gmra.mxu0 %v69_v38 }
  0x5e   :  { %1105 = vmatmul.msk.f32.gmra.mxu1 %vm117_vm0, %v74_v39 }
  0x65   :  { %203 = vmatmul.f32.gmra.mxu0 %v71_v40 }
  0x66   :  { %1106 = vmatmul.msk.f32.gmra.mxu1 %vm117_vm0, %v76_v41 }
  0x6d   :  { %206 = vmatmul.f32.gmra.mxu0 %v73_v42 }
  0x6e   :  { %1107 = vmatmul.msk.f32.gmra.mxu1 %vm117_vm0, %v78_v43 }
  0x75   :  { %209 = vmatmul.f32.gmra.mxu0 %v75_v44 }
  0x76   :  { %1108 = vmatmul.msk.f32.gmra.mxu1 %vm117_vm0, %v80_v45 }
  0x7d   :  { %212 = vmatmul.f32.gmra.mxu0 %v77_v46 }
  0x7e   :  { %1109 = vmatmul.msk.f32.gmra.mxu1 %vm117_vm0, %v82_v47 }
  0x85   :  { %215 = vmatmul.f32.gmra.mxu0 %v79_v48 }
  0x86   :  { %1110 = vmatmul.msk.f32.gmra.mxu1 %vm117_vm0, %v84_v49 }
  0x8d   :  { %218 = vmatmul.f32.gmra.mxu0 %v81_v50 }
  0x8e   :  { %1111 = vmatmul.msk.f32.gmra.mxu1 %vm117_vm0, %v86_v51 }
  0x95   :  { %221 = vmatmul.f32.gmra.mxu0 %v83_v52 }
  0x96   :  { %1112 = vmatmul.msk.f32.gmra.mxu1 %vm117_vm0, %v88_v53 }
  0x9b   :  { %v248_v55 = vpop.f32.mrf.mxu1 }
  0x9d   :  { %224 = vmatmul.f32.gmra.mxu0 %v85_v54 }
  0xa3   :  { %v251_v57 = vpop.f32.mrf.mxu1 }
  0xa5   :  { %227 = vmatmul.f32.gmra.mxu0 %v87_v56 }
  0xaa   :  { %v183_v59 = vpop.f32.mrf.mxu0 }
  0xab   :  { %v184_v60 = vadd.f32 %v1316_v58, %v183_v59  ;;  %v254_v62 = vpop.f32.mrf.mxu1 }
  0xad   :  { %v1319_v61 = vadd.f32 %v248_v55, %v184_v60 }
  0xaf   :  { %2043 = vst [vmem:[#allocation12_spill] sm:$0xff] %v1319_v61  ;;  %v1378_v43 = vmul.f32 0.70710677, %v1319_v61 }
  0xb1   :  { %2050 = vst [vmem:[#allocation19_spill] sm:$0xff] %v1378_v43  ;;  %v328_v54 = vmul.f32 %v1378_v43, %v1378_v43 }
  0xb2   :  { %v186_v63 = vpop.f32.mrf.mxu0 }
  0xb3   :  { %v187_v0 = vadd.f32 %v1316_v58, %v186_v63  ;;  %v257_v2 = vpop.f32.mrf.mxu1 }
  0xb5   :  { %v1322_v1 = vadd.f32 %v251_v57, %v187_v0 }
  0xb7   :  { %2044 = vst [vmem:[#allocation13_spill] sm:$0xff] %v1322_v1  ;;  %v1381_v44 = vmul.f32 0.70710677, %v1322_v1 }
  0xb9   :  { %2051 = vst [vmem:[#allocation20_spill] sm:$0xff] %v1381_v44  ;;  %v368_v55 = vmul.f32 %v1381_v44, %v1381_v44 }
  0xba   :  { %v189_v3 = vpop.f32.mrf.mxu0 }
  0xbb   :  { %v190_v4 = vadd.f32 %v1316_v58, %v189_v3  ;;  %v260_v6 = vpop.f32.mrf.mxu1  ;;  %v1407_v3 = vmin.f32 %v328_v54, 16.0 }
  0xbd   :  { %v1325_v5 = vadd.f32 %v254_v62, %v190_v4  ;;  %v1409_v4 = vmin.f32 %v368_v55, 16.0 }
  0xbf   :  { %2045 = vst [vmem:[#allocation14_spill] sm:$0xff] %v1325_v5  ;;  %v1337_v19 = vmul.f32 0.70710677, %v1325_v5 }
  0xc1   :  { %2048 = vst [vmem:[#allocation17_spill] sm:$0xff] %v1337_v19  ;;  %v408_v24 = vmul.f32 %v1337_v19, %v1337_v19 }
  0xc2   :  { %v192_v7 = vpop.f32.mrf.mxu0 }
  0xc3   :  { %v193_v8 = vadd.f32 %v1316_v58, %v192_v7  ;;  %v263_v10 = vpop.f32.mrf.mxu1  ;;  %v1357_v30 = vmin.f32 %v408_v24, 16.0  ;;  %v370_v24 = vmul.f32 2.1237322e-06, %v1409_v4 }
  0xc5   :  { %v1328_v9 = vadd.f32 %v257_v2, %v193_v8  ;;  %v410_v37 = vmul.f32 2.1237322e-06, %v1357_v30 }
  0xc7   :  { %2046 = vst [vmem:[#allocation15_spill] sm:$0xff] %v1328_v9  ;;  %v1344_v23 = vmul.f32 0.70710677, %v1328_v9  ;;  %v411_v47 = vadd.f32 0.00028619796, %v410_v37 }
  0xc9   :  { %2049 = vst [vmem:[#allocation18_spill] sm:$0xff] %v1344_v23  ;;  %v448_v29 = vmul.f32 %v1344_v23, %v1344_v23  ;;  %v412_v57 = vmul.f32 %v411_v47, %v1357_v30 }
  0xca   :  { %v195_v11 = vpop.f32.mrf.mxu0 }
  0xcb   :  { %v196_v12 = vadd.f32 %v1316_v58, %v195_v11  ;;  %v266_v14 = vpop.f32.mrf.mxu1  ;;  %v1367_v36 = vmin.f32 %v448_v29, 16.0  ;;  %v413_v8 = vadd.f32 0.0036580483, %v412_v57 }
  0xcd   :  { %v1331_v13 = vadd.f32 %v260_v6, %v196_v12  ;;  %v450_v45 = vmul.f32 2.1237322e-06, %v1367_v36 }
  0xcf   :  { %2047 = vst [vmem:[#allocation16_spill] sm:$0xff] %v1331_v13  ;;  %v1340_v20 = vmul.f32 0.70710677, %v1331_v13  ;;  %v451_v56 = vadd.f32 0.00028619796, %v450_v45 }
  0xd1   :  { %v488_v25 = vmul.f32 %v1340_v20, %v1340_v20  ;;  %v452_v6 = vmul.f32 %v451_v56, %v1367_v36 }
  0xd2   :  { %v198_v15 = vpop.f32.mrf.mxu0 }
  0xd3   :  { %v199_v16 = vadd.f32 %v1316_v58, %v198_v15  ;;  %v269_v18 = vpop.f32.mrf.mxu1  ;;  %v1359_v31 = vmin.f32 %v488_v25, 16.0  ;;  %v453_v25 = vadd.f32 0.0036580483, %v452_v6 }
  0xd5   :  { %v1334_v17 = vadd.f32 %v263_v10, %v199_v16  ;;  %v490_v38 = vmul.f32 2.1237322e-06, %v1359_v31 }
  0xd7   :  { %v1353_v28 = vmul.f32 0.70710677, %v1334_v17  ;;  %v491_v48 = vadd.f32 0.00028619796, %v490_v38 }
  0xd9   :  { %v528_v32 = vmul.f32 %v1353_v28, %v1353_v28  ;;  %v492_v59 = vmul.f32 %v491_v48, %v1359_v31  ;;  %v371_v48 = vadd.f32 0.00028619796, %v370_v24 }
  0xda   :  { %v201_v21 = vpop.f32.mrf.mxu0 }
  0xdb   :  { %v202_v22 = vadd.f32 %v1316_v58, %v201_v21  ;;  %v272_v27 = vpop.f32.mrf.mxu1  ;;  %v1373_v40 = vmin.f32 %v528_v32, 16.0  ;;  %v493_v10 = vadd.f32 0.0036580483, %v492_v59 }
  0xdd   :  { %v1350_v26 = vadd.f32 %v266_v14, %v202_v22  ;;  %v530_v49 = vmul.f32 2.1237322e-06, %v1373_v40  ;;  %v330_v22 = vmul.f32 2.1237322e-06, %v1407_v3  ;;  %v494_v29 = vmul.f32 %v493_v10, %v1359_v31 }
  0xdf   :  { %v1364_v33 = vmul.f32 0.70710677, %v1350_v26  ;;  %v531_v62 = vadd.f32 0.00028619796, %v530_v49  ;;  %v331_v47 = vadd.f32 0.00028619796, %v330_v22  ;;  %v454_v49 = vmul.f32 %v453_v25, %v1367_v36 }
  0xe1   :  { %v568_v41 = vmul.f32 %v1364_v33, %v1364_v33  ;;  %v532_v12 = vmul.f32 %v531_v62, %v1373_v40  ;;  %v332_v6 = vmul.f32 %v331_v47, %v1407_v3  ;;  %v455_v10 = vadd.f32 0.05243302, %v454_v49 }
  0xe2   :  { %v204_v34 = vpop.f32.mrf.mxu0 }
  0xe3   :  { %v205_v35 = vadd.f32 %v1316_v58, %v204_v34  ;;  %v275_v42 = vpop.f32.mrf.mxu1  ;;  %v1388_v50 = vmin.f32 %v568_v41, 16.0 }
  0xe5   :  { %v1371_v39 = vadd.f32 %v269_v18, %v205_v35  ;;  %v570_v63 = vmul.f32 2.1237322e-06, %v1388_v50  ;;  %v533_v35 = vadd.f32 0.0036580483, %v532_v12 }
  0xe7   :  { %v1385_v46 = vmul.f32 0.70710677, %v1371_v39  ;;  %v571_v14 = vadd.f32 0.00028619796, %v570_v63 }
  0xe9   :  { %v608_v51 = vmul.f32 %v1385_v46, %v1385_v46  ;;  %v572_v37 = vmul.f32 %v571_v14, %v1388_v50 }
  0xea   :  { %v207_v52 = vpop.f32.mrf.mxu0 }
  0xeb   :  { %v208_v53 = vadd.f32 %v1316_v58, %v207_v52  ;;  %v1402_v0 = vmin.f32 %v608_v51, 16.0  ;;  %v278_v7 = vpop.f32.mrf.mxu1  ;;  %v495_v52 = vadd.f32 0.05243302, %v494_v29  ;;  %v573_v54 = vadd.f32 0.0036580483, %v572_v37 }
  0xed   :  { %v1399_v60 = vadd.f32 %v272_v27, %v208_v53  ;;  %v610_v15 = vmul.f32 2.1237322e-06, %v1402_v0  ;;  %v414_v27 = vmul.f32 %v413_v8, %v1357_v30  ;;  %v372_v8 = vmul.f32 %v371_v48, %v1409_v4 }
  0xee   :  { %v496_v12 = vmul.f32 %v495_v52, %v1359_v31 }
  0xef   :  { %v1405_v2 = vmul.f32 0.70710677, %v1399_v60  ;;  %v611_v38 = vadd.f32 0.00028619796, %v610_v15  ;;  %v415_v51 = vadd.f32 0.05243302, %v414_v27 }
  0xf0   :  { %v333_v27 = vadd.f32 0.0036580483, %v332_v6  ;;  %v373_v29 = vadd.f32 0.0036580483, %v372_v8 }
  0xf1   :  { %v648_v11 = vmul.f32 %v1405_v2, %v1405_v2  ;;  %v612_v55 = vmul.f32 %v611_v38, %v1402_v0  ;;  %v497_v38 = vadd.f32 0.18741608, %v496_v12 }
  0xf2   :  { %v210_v16 = vpop.f32.mrf.mxu0 }
  0xf3   :  { %v1416_v18 = vmin.f32 %v648_v11, 16.0  ;;  %v211_v21 = vadd.f32 %v1316_v58, %v210_v16  ;;  %v281_v57 = vpop.f32.mrf.mxu1  ;;  %v416_v11 = vmul.f32 %v415_v51, %v1357_v30  ;;  %v613_v22 = vadd.f32 0.0036580483, %v612_v55 }
  0xf4   :  { %v1460_v55 = vmul.f32 %v333_v27, %v1407_v3  ;;  %v498_v8 = vmul.f32 %v497_v38, %v1359_v31 }
  0xf5   :  { %v650_v32 = vmul.f32 2.1237322e-06, %v1416_v18  ;;  %v1424_v34 = vadd.f32 %v275_v42, %v211_v21  ;;  %v534_v42 = vmul.f32 %v533_v35, %v1373_v40  ;;  %v574_v21 = vmul.f32 %v573_v54, %v1388_v50 }
  0xf6   :  { %v417_v37 = vadd.f32 0.18741608, %v416_v11  ;;  %v614_v48 = vmul.f32 %v613_v22, %v1402_v0  ;;  %2052 = vst [vmem:[#allocation21_spill] sm:$0xff] %v1460_v55 }
  0xf7   :  { %v651_v41 = vadd.f32 0.00028619796, %v650_v32  ;;  %v1428_v45 = vmul.f32 0.70710677, %v1424_v34  ;;  %v535_v16 = vadd.f32 0.05243302, %v534_v42  ;;  %v456_v32 = vmul.f32 %v455_v10, %v1367_v36 }
  0xf8   :  { %v575_v47 = vadd.f32 0.05243302, %v574_v21  ;;  %v1521_v61 = vmul.f32 0.5, %v1424_v34 }
  0xf9   :  { %v688_v53 = vmul.f32 %v1428_v45, %v1428_v45  ;;  %v652_v59 = vmul.f32 %v651_v41, %v1416_v18 }
  0xfa   :  { %v213_v56 = vpop.f32.mrf.mxu0 }
  0xfb   :  { %v1436_v62 = vmin.f32 %v688_v53, 16.0  ;;  %v214_v63 = vadd.f32 %v1316_v58, %v213_v56  ;;  %v653_v24 = vadd.f32 0.0036580483, %v652_v59  ;;  %v1463_v56 = vmul.f32 %v373_v29, %v1409_v4  ;;  %v284_v6 = vpop.f32.mrf.mxu1 }
  0xfc   :  { %v457_v59 = vadd.f32 0.18741608, %v456_v32 }
  0xfd   :  { %v690_v14 = vmul.f32 2.1237322e-06, %v1436_v62  ;;  %v1444_v15 = vadd.f32 %v278_v7, %v214_v63  ;;  %v536_v7 = vmul.f32 %v535_v16, %v1373_v40  ;;  %v654_v52 = vmul.f32 %v653_v24, %v1416_v18  ;;  %2053 = vst [vmem:[#allocation22_spill] sm:$0xff] %v1463_v56 }
  0xfe   :  { %v701_v54 = vmul.f32 3.8918573e-05, %v1436_v62  ;;  %v576_v24 = vmul.f32 %v575_v47, %v1388_v50  ;;  %v458_v32 = vmul.f32 %v457_v59, %v1367_v36 }
  0xff   :  { %v691_v25 = vadd.f32 0.00028619796, %v690_v14  ;;  %v1449_v35 = vmul.f32 0.70710677, %v1444_v15  ;;  %v1472_v14 = vmul.f32 %v417_v37, %v1357_v30  ;;  %v537_v16 = vadd.f32 0.18741608, %v536_v7 }
 0x100   :  { %v702_v12 = vadd.f32 0.001143296, %v701_v54  ;;  %v655_v27 = vadd.f32 0.05243302, %v654_v52  ;;  %v499_v37 = vadd.f32 1.1283791, %v498_v8 }
 0x101   :  { %v692_v41 = vmul.f32 %v691_v25, %v1436_v62  ;;  %v728_v49 = vmul.f32 %v1449_v35, %v1449_v35  ;;  %2054 = vst [vmem:[#allocation23_spill] sm:$0xff] %v1472_v14  ;;  %v615_v25 = vadd.f32 0.05243302, %v614_v48  ;;  %v1483_v7 = vmul.f32 0.5, %v1334_v17 }
 0x102   :  { %v216_v51 = vpop.f32.mrf.mxu0  ;;  %v703_v29 = vmul.f32 %v702_v12, %v1436_v62  ;;  %v538_v54 = vmul.f32 %v537_v16, %v1373_v40  ;;  %v577_v59 = vadd.f32 0.18741608, %v576_v24  ;;  %v1495_v12 = vadd.f32 1.1283791, %v458_v32 }
 0x103   :  { %v693_v53 = vadd.f32 0.0036580483, %v692_v41  ;;  %v217_v42 = vadd.f32 %v1316_v58, %v216_v51  ;;  %v1465_v63 = vmin.f32 %v728_v49, 16.0  ;;  %2055 = vst [vmem:[#allocation24_spill] sm:$0xff] %v1483_v7  ;;  %v1486_v49 = vmul.f32 0.5, %v1350_v26 }
 0x104   :  { %v616_v8 = vmul.f32 %v615_v25, %v1402_v0  ;;  %2057 = vst [vmem:[#allocation26_spill] sm:$0xff] %v1495_v12  ;;  %v656_v26 = vmul.f32 %v655_v27, %v1416_v18 }
 0x105   :  { %v694_v10 = vmul.f32 %v693_v53, %v1436_v62  ;;  %v1469_v11 = vadd.f32 %v281_v57, %v217_v42  ;;  %v730_v21 = vmul.f32 2.1237322e-06, %v1465_v63  ;;  %v741_v22 = vmul.f32 3.8918573e-05, %v1465_v63  ;;  %2056 = vst [vmem:[#allocation25_spill] sm:$0xff] %v1486_v49 }
 0x106   :  { %v704_v42 = vadd.f32 0.014752088, %v703_v29  ;;  %v287_v29 = vpop.f32.mrf.mxu1 }
 0x107   :  { %v731_v38 = vadd.f32 0.00028619796, %v730_v21  ;;  %v1480_v57 = vmul.f32 0.70710677, %v1469_v11  ;;  %v742_v41 = vadd.f32 0.001143296, %v741_v22  ;;  %v1501_v22 = vmul.f32 %v499_v37, %v1340_v20 }
 0x108   :  { %v695_v51 = vadd.f32 0.05243302, %v694_v10  ;;  %v705_v27 = vmul.f32 %v704_v42, %v1436_v62  ;;  %v617_v20 = vadd.f32 0.18741608, %v616_v8 }
 0x109   :  { %v732_v47 = vmul.f32 %v731_v38, %v1465_v63  ;;  %v768_v48 = vmul.f32 %v1480_v57, %v1480_v57  ;;  %v743_v53 = vmul.f32 %v742_v41, %v1465_v63  ;;  %2058 = vst [vmem:[#allocation27_spill] sm:$0xff] %v1501_v22  ;;  %v1504_v38 = vmul.f32 0.5, %v1371_v39 }
 0x10a   :  { %v219_v52 = vpop.f32.mrf.mxu0  ;;  %v696_v16 = vmul.f32 %v695_v51, %v1436_v62  ;;  %v657_v39 = vadd.f32 0.18741608, %v656_v26 }
 0x10b   :  { %v220_v17 = vadd.f32 %v1316_v58, %v219_v52  ;;  %v733_v10 = vadd.f32 0.0036580483, %v732_v47  ;;  %v1498_v21 = vmin.f32 %v768_v48, 16.0  ;;  %v744_v41 = vadd.f32 0.014752088, %v743_v53 }
 0x10c   :  { %v539_v47 = vadd.f32 1.1283791, %v538_v54  ;;  %v578_v48 = vmul.f32 %v577_v59, %v1388_v50  ;;  %v697_v53 = vadd.f32 0.18741608, %v696_v16  ;;  %v658_v16 = vmul.f32 %v657_v39, %v1416_v18 }
 0x10d   :  { %v1507_v24 = vadd.f32 %v284_v6, %v220_v17  ;;  %v770_v25 = vmul.f32 2.1237322e-06, %v1498_v21  ;;  %v781_v32 = vmul.f32 3.8918573e-05, %v1498_v21  ;;  %v734_v51 = vmul.f32 %v733_v10, %v1465_v63 }
 0x10e   :  { %v1518_v17 = vmul.f32 0.5, %v1399_v60  ;;  %v745_v26 = vmul.f32 %v744_v41, %v1465_v63  ;;  %v706_v10 = vadd.f32 0.112945676, %v705_v27  ;;  %v698_v27 = vmul.f32 %v697_v53, %v1436_v62  ;;  %v290_v53 = vpop.f32.mrf.mxu1 }
 0x10f   :  { %v1514_v37 = vmul.f32 0.70710677, %v1507_v24  ;;  %v771_v6 = vadd.f32 0.00028619796, %v770_v25  ;;  %v782_v52 = vadd.f32 0.001143296, %v781_v32  ;;  %v618_v32 = vmul.f32 %v617_v20, %v1402_v0 }
 0x110   :  { %v579_v25 = vadd.f32 1.1283791, %v578_v48  ;;  %v735_v1 = vadd.f32 0.05243302, %v734_v51  ;;  %v746_v20 = vadd.f32 0.112945676, %v745_v26  ;;  %v1542_v39 = vmul.f32 %v539_v47, %v1353_v28 }
 0x111   :  { %v808_v42 = vmul.f32 %v1514_v37, %v1514_v37  ;;  %v772_v54 = vmul.f32 %v771_v6, %v1498_v21  ;;  %v783_v8 = vmul.f32 %v782_v52, %v1498_v21  ;;  %v1534_v6 = vmul.f32 0.5, %v1444_v15 }
 0x112   :  { %v222_v59 = vpop.f32.mrf.mxu0  ;;  %v1544_v51 = vadd.f32 1.1283791, %v618_v32 }
 0x113   :  { %v1529_v60 = vmin.f32 %v808_v42, 16.0  ;;  %v223_v34 = vadd.f32 %v1316_v58, %v222_v59  ;;  %v773_v43 = vadd.f32 0.0036580483, %v772_v54  ;;  %v784_v44 = vadd.f32 0.014752088, %v783_v8 }
 0x114   :  { %v707_v42 = vmul.f32 %v706_v10, %v1436_v62  ;;  %v1548_v59 = vadd.f32 1.1283791, %v658_v16  ;;  %v699_v10 = vadd.f32 1.1283791, %v698_v27 }
 0x115   :  { %v810_v52 = vmul.f32 2.1237322e-06, %v1529_v60  ;;  %v288_v5 = vadd.f32 %v287_v29, %v223_v34  ;;  %v821_v41 = vmul.f32 3.8918573e-05, %v1529_v60  ;;  %v785_v48 = vmul.f32 %v784_v44, %v1498_v21 }
 0x116   :  { %v736_v29 = vmul.f32 %v735_v1, %v1465_v63  ;;  %v774_v8 = vmul.f32 %v773_v43, %v1498_v21  ;;  %v1553_v44 = vmul.f32 0.5, %v1469_v11  ;;  %v708_v1 = vadd.f32 0.4994258, %v707_v42 }
 0x117   :  { %v811_v54 = vadd.f32 0.00028619796, %v810_v52  ;;  %v1546_v15 = vmul.f32 0.70710677, %v288_v5  ;;  %v822_v34 = vadd.f32 0.001143296, %v821_v41  ;;  %v747_v52 = vmul.f32 %v746_v20, %v1465_v63 }
 0x118   :  { %v786_v47 = vadd.f32 0.112945676, %v785_v48  ;;  %v737_v55 = vadd.f32 0.18741608, %v736_v29  ;;  %v775_v14 = vadd.f32 0.05243302, %v774_v8 }
 0x119   :  { %v812_v26 = vmul.f32 %v811_v54, %v1529_v60  ;;  %v848_v28 = vmul.f32 %v1546_v15, %v1546_v15  ;;  %v823_v16 = vmul.f32 %v822_v34, %v1529_v60  ;;  %v1565_v54 = vmul.f32 %v579_v25, %v1364_v33 }
 0x11a   :  { %v225_v32 = vpop.f32.mrf.mxu0  ;;  %v787_v11 = vmul.f32 %v786_v47, %v1498_v21  ;;  %v709_v47 = vmul.f32 %v708_v1, %v1436_v62  ;;  %v1575_v33 = vmul.f32 %v699_v10, %v1428_v45  ;;  %v1578_v25 = vmul.f32 0.5, %v1507_v24 }
 0x11b   :  { %v813_v19 = vadd.f32 0.0036580483, %v812_v26  ;;  %v1560_v43 = vmin.f32 %v848_v28, 16.0  ;;  %v226_v41 = vadd.f32 %v1316_v58, %v225_v32  ;;  %v824_v48 = vadd.f32 0.014752088, %v823_v16 }
 0x11c   :  { %v788_v26 = vadd.f32 0.4994258, %v787_v11  ;;  %v748_v28 = vadd.f32 0.4994258, %v747_v52  ;;  %v776_v8 = vmul.f32 %v775_v14, %v1498_v21  ;;  %v738_v52 = vmul.f32 %v737_v55, %v1465_v63 }
 0x11d   :  { %v814_v27 = vmul.f32 %v813_v19, %v1529_v60  ;;  %v850_v34 = vmul.f32 2.1237322e-06, %v1560_v43  ;;  %v1569_v13 = vadd.f32 %v290_v53, %v226_v41  ;;  %v861_v20 = vmul.f32 3.8918573e-05, %v1560_v43  ;;  %v293_v41 = vpop.f32.mrf.mxu1 }
 0x11e   :  { %v825_v42 = vmul.f32 %v824_v48, %v1529_v60  ;;  %v661_v19 = vmul.f32 3.8918573e-05, %v1416_v18  ;;  %v789_v16 = vmul.f32 %v788_v26, %v1498_v21  ;;  %v749_v14 = vmul.f32 %v748_v28, %v1465_v63 }
 0x11f   :  { %v851_v29 = vadd.f32 0.00028619796, %v850_v34  ;;  %v1583_v53 = vmul.f32 0.70710677, %v1569_v13  ;;  %v862_v32 = vadd.f32 0.001143296, %v861_v20 }
 0x120   :  { %v815_v62 = vadd.f32 0.05243302, %v814_v27  ;;  %v826_v10 = vadd.f32 0.112945676, %v825_v42  ;;  %v1592_v48 = vadd.f32 1.0, %v709_v47  ;;  %v1596_v27 = vadd.f32 1.0, %v789_v16 }
 0x121   :  { %v852_v45 = vmul.f32 %v851_v29, %v1560_v43  ;;  %v888_v24 = vmul.f32 %v1583_v53, %v1583_v53  ;;  %v863_v11 = vmul.f32 %v862_v32, %v1560_v43  ;;  %v777_v26 = vadd.f32 0.18741608, %v776_v8 }
 0x122   :  { %v228_v1 = vpop.f32.mrf.mxu0  ;;  %v827_v55 = vmul.f32 %v826_v10, %v1529_v60  ;;  %v1598_v42 = vmul.f32 0.5, %v288_v5  ;;  %v816_v56 = vmul.f32 %v815_v62, %v1529_v60  ;;  %v739_v47 = vadd.f32 1.1283791, %v738_v52 }
 0x123   :  { %v853_v34 = vadd.f32 0.0036580483, %v852_v45  ;;  %v229_v20 = vadd.f32 %v1316_v58, %v228_v1  ;;  %v1600_v29 = vmin.f32 %v888_v24, 16.0  ;;  %v864_v9 = vadd.f32 0.014752088, %v863_v11 }
 0x124   :  { %v828_v28 = vadd.f32 0.4994258, %v827_v55  ;;  %1137 = vrcp.f32 %v1596_v27  ;;  %v1609_v8 = vadd.f32 1.0, %v749_v14  ;;  %v778_v52 = vmul.f32 %v777_v26, %v1498_v21 }
 0x125   :  { %v854_v32 = vmul.f32 %v853_v34, %v1560_v43  ;;  %v294_v63 = vadd.f32 %v293_v41, %v229_v20  ;;  %v890_v45 = vmul.f32 2.1237322e-06, %v1600_v29  ;;  %v901_v58 = vmul.f32 3.8918573e-05, %v1600_v29 }
 0x126   :  { %v865_v16 = vmul.f32 %v864_v9, %v1560_v43  ;;  %v829_v5 = vmul.f32 %v828_v28, %v1529_v60  ;;  %1139 = vrcp.f32 %v1592_v48  ;;  %v817_v41 = vadd.f32 0.18741608, %v816_v56 }
 0x127   :  { %v855_v10 = vadd.f32 0.05243302, %v854_v32  ;;  %v891_v24 = vadd.f32 0.00028619796, %v890_v45  ;;  %v1611_v62 = vmul.f32 0.70710677, %v294_v63  ;;  %v1618_v9 = vmul.f32 %v739_v47, %v1449_v35 }
 0x128   :  { %v902_v1 = vadd.f32 0.001143296, %v901_v58  ;;  %v866_v11 = vadd.f32 0.112945676, %v865_v16  ;;  %v1615_v34 = vadd.f32 1.0, %v829_v5  ;;  %v818_v58 = vmul.f32 %v817_v41, %v1529_v60 }
 0x129   :  { %v892_v20 = vmul.f32 %v891_v24, %v1600_v29  ;;  %v928_v14 = vmul.f32 %v1611_v62, %v1611_v62  ;;  %v856_v32 = vmul.f32 %v855_v10, %v1560_v43  ;;  %v1627_v56 = vadd.f32 0.001143296, %v661_v19 }
 0x12a   :  { %v903_v55 = vmul.f32 %v902_v1, %v1600_v29  ;;  %v867_v28 = vmul.f32 %v866_v11, %v1560_v43  ;;  %1141 = vrcp.f32 %v1615_v34  ;;  %v1632_v47 = vpop.eup %1137  ;;  %v779_v45 = vadd.f32 1.1283791, %v778_v52 }
 0x12b   :  { %v893_v21 = vadd.f32 0.0036580483, %v892_v20  ;;  %v1629_v26 = vmin.f32 %v928_v14, 16.0  ;;  %1143 = vrcp.f32 %v1609_v8  ;;  %v857_v20 = vadd.f32 0.18741608, %v856_v32 }
 0x12c   :  { %v904_v35 = vadd.f32 0.014752088, %v903_v55  ;;  %v868_v16 = vadd.f32 0.4994258, %v867_v28  ;;  %v1636_v5 = vpop.eup %1139  ;;  %v1643_v14 = vmul.f32 0.5, %v1569_v13  ;;  %v1652_v22 = vmul.f32 %v779_v45, %v1480_v57 }
 0x12d   :  { %v894_v24 = vmul.f32 %v893_v21, %v1600_v29  ;;  %v930_v19 = vmul.f32 2.1237322e-06, %v1629_v26  ;;  %v941_v1 = vmul.f32 3.8918573e-05, %v1629_v26  ;;  %v792_v21 = vmul.f32 %v1632_v47, %v1596_v27 }
 0x12e   :  { %v905_v11 = vmul.f32 %v904_v35, %v1600_v29  ;;  %v869_v52 = vmul.f32 %v868_v16, %v1560_v43  ;;  %v800_v13 = vand.u32 2147483647, %v1596_v27  ;;  %v819_v16 = vadd.f32 1.1283791, %v818_v58 }
 0x12f   :  { %v895_v41 = vadd.f32 0.05243302, %v894_v24  ;;  %v931_v55 = vadd.f32 0.00028619796, %v930_v19  ;;  %v942_v28 = vadd.f32 0.001143296, %v941_v1  ;;  %v858_v45 = vmul.f32 %v857_v20, %v1560_v43 }
 0x130   :  { %v1649_v10 = vpop.eup %1141  ;;  %v906_v35 = vadd.f32 0.112945676, %v905_v11  ;;  %v1654_v32 = vadd.f32 1.0, %v869_v52  ;;  %v1664_v23 = vmul.f32 0.5, %v294_v63  ;;  %v793_v58 = vsub.f32 1.0, %v792_v21 }
 0x131   :  { %v1657_v12 = vpop.eup %1143  ;;  %v932_v24 = vmul.f32 %v931_v55, %v1629_v26  ;;  %v943_v19 = vmul.f32 %v942_v28, %v1629_v26  ;;  %v832_v1 = vmul.f32 %v1649_v10, %v1615_v34  ;;  %v896_v60 = vmul.f32 %v895_v41, %v1600_v29 }
 0x132   :  { %v907_v57 = vmul.f32 %v906_v35, %v1600_v29  ;;  %1145 = vrcp.f32 %v1654_v32  ;;  %v842_v28 = vand.u32 2147483648, %v1615_v34  ;;  %v752_v49 = vmul.f32 %v1657_v12, %v1609_v8 }
 0x133   :  { %v933_v11 = vadd.f32 0.0036580483, %v932_v24  ;;  %v944_v52 = vadd.f32 0.014752088, %v943_v19  ;;  %v833_v55 = vsub.f32 1.0, %v832_v1  ;;  %v820_v41 = vmul.f32 %v819_v16, %v1514_v37 }
 0x134   :  { %v908_v7 = vadd.f32 0.4994258, %v907_v57  ;;  %vm836_vm1 = vweird.f32 %v1615_v34  ;;  %vm796_vm2 = vweird.f32 %v1596_v27  ;;  %v897_v43 = vadd.f32 0.18741608, %v896_v60 }
 0x135   :  { %v934_v63 = vmul.f32 %v933_v11, %v1629_v26  ;;  %v945_v35 = vmul.f32 %v944_v52, %v1629_v26  ;;  %v834_v21 = vmul.f32 %v1649_v10, %v833_v55  ;;  %v840_v24 = vand.u32 2147483647, %v1615_v34 }
 0x136   :  { %v909_v20 = vmul.f32 %v908_v7, %v1600_v29  ;;  %v859_v19 = vadd.f32 1.1283791, %v858_v45  ;;  %v794_v37 = vmul.f32 %v1632_v47, %v793_v58  ;;  %vm837_vm3 = vweird.f32 %v1649_v10 }
 0x137   :  { %v935_v1 = vadd.f32 0.05243302, %v934_v63  ;;  %v946_v57 = vadd.f32 0.112945676, %v945_v35  ;;  %v835_v52 = vadd.f32 %v1649_v10, %v834_v21  ;;  %v843_v60 = vor.u32 1.1754944e-38, %v842_v28  ;;  %vm838_vm6 = vmor %vm836_vm1, %vm837_vm3 }
 0x138   :  { %v1681_v16 = vpop.eup %1145  ;;  %v1683_v11 = vadd.f32 1.0, %v909_v20  ;;  %vm797_vm4 = vweird.f32 %v1632_v47  ;;  %vm1692_vm5 = vcmp.eq.f32.partialorder %v800_v13, 8.507059e+37  ;;  %v898_v63 = vmul.f32 %v897_v43, %v1600_v29 }
 0x139   :  { %v936_v7 = vmul.f32 %v935_v1, %v1629_v26  ;;  %v947_v55 = vmul.f32 %v946_v57, %v1629_v26  ;;  %v872_v45 = vmul.f32 %v1681_v16, %v1654_v32  ;;  %v880_v35 = vand.u32 2147483647, %v1654_v32  ;;  %vm1721_vm11 = vmor %vm796_vm2, %vm797_vm4 }
 0x13a   :  { %1147 = vrcp.f32 %v1683_v11  ;;  %v753_v28 = vsub.f32 1.0, %v752_v49  ;;  %v795_v57 = vadd.f32 %v1632_v47, %v794_v37  ;;  %vm756_vm7 = vweird.f32 %v1609_v8 }
 0x13b   :  { %v937_v20 = vadd.f32 0.18741608, %v936_v7  ;;  %v948_v21 = vadd.f32 0.4994258, %v947_v55  ;;  %v873_v1 = vsub.f32 1.0, %v872_v45  ;;  %v1704_v13 = vmul.f32 %v859_v19, %v1546_v15 }
 0x13c   :  { %v839_v29 = vsel %vm838_vm6, %v1649_v10, %v835_v52  ;;  %vm841_vm8 = vcmp.eq.f32.partialorder %v840_v24, 8.507059e+37  ;;  %v802_v43 = vand.u32 2147483648, %v1596_v27  ;;  %vm876_vm9 = vweird.f32 %v1654_v32 }
 0x13d   :  { %v949_v49 = vmul.f32 %v948_v21, %v1629_v26  ;;  %v874_v7 = vmul.f32 %v1681_v16, %v873_v1  ;;  %v844_v34 = vsel %vm841_vm8, %v843_v60, %v839_v29  ;;  %v899_v55 = vadd.f32 1.1283791, %v898_v63 }
 0x13e   :  { %v938_v37 = vmul.f32 %v937_v20, %v1629_v26  ;;  %vm1712_vm10 = vcmp.eq.f32.partialorder %v880_v35, 8.507059e+37  ;;  %v882_v15 = vand.u32 2147483648, %v1654_v32  ;;  %v754_v24 = vmul.f32 %v1657_v12, %v753_v28 }
 0x13f   :  { %v1726_v19 = vadd.f32 1.0, %v949_v49  ;;  %v920_v26 = vand.u32 2147483647, %v1683_v11  ;;  %v922_v52 = vand.u32 2147483648, %v1683_v11  ;;  %v799_v60 = vsel %vm1721_vm11, %v1632_v47, %v795_v57 }
 0x140   :  { %v2065_v63 = vand.u32 2147483647, %v1609_v8  ;;  %v1148_v35 = vpop.eup %1147  ;;  %v875_v20 = vadd.f32 %v1681_v16, %v874_v7  ;;  %vm877_vm13 = vweird.f32 %v1681_v16  ;;  %v845_v28 = vmul.f32 %v844_v34, %v820_v41 }
 0x141   :  { %v803_v21 = vor.u32 1.1754944e-38, %v802_v43  ;;  %1149 = vrcp.f32 %v1726_v19  ;;  %v755_v1 = vadd.f32 %v1657_v12, %v754_v24  ;;  %vm757_vm14 = vweird.f32 %v1657_v12  ;;  %vm1759_vm1 = vmor %vm876_vm9, %vm877_vm13 }
 0x142   :  { %vm1735_vm12 = vcmp.eq.f32.partialorder %v2065_v63, 8.507059e+37  ;;  %v712_v47 = vmul.f32 %v1636_v5, %v1592_v48  ;;  %v939_v57 = vadd.f32 1.1283791, %v938_v37  ;;  %v912_v29 = vmul.f32 %v1148_v35, %v1683_v11  ;;  %vm1771_vm2 = vmor %vm756_vm7, %vm757_vm14 }
 0x143   :  { %v883_v49 = vor.u32 1.1754944e-38, %v882_v15  ;;  %v804_v7 = vsel %vm1692_vm5, %v803_v21, %v799_v60  ;;  %v900_v10 = vmul.f32 %v899_v55, %v1583_v53  ;;  %vm916_vm15 = vweird.f32 %v1683_v11 }
 0x144   :  { %vm1751_vm0 = vcmp.eq.f32.partialorder %v920_v26, 8.507059e+37  ;;  %v923_v43 = vor.u32 1.1754944e-38, %v922_v52  ;;  %v960_v58 = vand.u32 2147483647, %v1726_v19  ;;  %v913_v37 = vsub.f32 1.0, %v912_v29 }
 0x145   :  { %v879_v53 = vsel %vm1759_vm1, %v1681_v16, %v875_v20  ;;  %v1125_v55 = vclamps-f32 %v845_v28, 1.0  ;;  %v805_v32 = vmul.f32 %v804_v7, %v1652_v22  ;;  %v759_v24 = vsel %vm1771_vm2, %v1657_v12, %v755_v1 }
 0x146   :  { %v2074_v26 = vand.u32 2147483648, %v1609_v8  ;;  %v713_v60 = vsub.f32 1.0, %v712_v47  ;;  %v940_v16 = vmul.f32 %v939_v57, %v1611_v62  ;;  %v962_v63 = vand.u32 2147483648, %v1726_v19 }
 0x147   :  { %v914_v20 = vmul.f32 %v1148_v35, %v913_v37  ;;  %vm917_vm3 = vweird.f32 %v1148_v35  ;;  %v1150_v28 = vpop.eup %1149  ;;  %vm956_vm4 = vweird.f32 %v1726_v19  ;;  %v884_v22 = vsel %vm1712_vm10, %v883_v49, %v879_v53 }
 0x148   :  { %v763_v52 = vor.u32 1.1754944e-38, %v2074_v26  ;;  %v714_v21 = vmul.f32 %v1636_v5, %v713_v60  ;;  %vm717_vm5 = vweird.f32 %v1636_v5  ;;  %v952_v12 = vmul.f32 %v1150_v28, %v1726_v19  ;;  %vm918_vm7 = vmor %vm916_vm15, %vm917_vm3 }
 0x149   :  { %vm1789_vm6 = vcmp.eq.f32.partialorder %v960_v58, 8.507059e+37  ;;  %v915_v62 = vadd.f32 %v1148_v35, %v914_v20  ;;  %v980_v1 = vadd.f32 1.0, %v1125_v55  ;;  %v1124_v45 = vclamps-f32 %v805_v32, 1.0 }
 0x14a   :  { %v764_v47 = vsel %vm1735_vm12, %v763_v52, %v759_v24  ;;  %v715_v57 = vadd.f32 %v1636_v5, %v714_v21  ;;  %vm716_vm8 = vweird.f32 %v1592_v48  ;;  %v720_v29 = vand.u32 2147483647, %v1592_v48 }
 0x14b   :  { %v953_v49 = vsub.f32 1.0, %v952_v12  ;;  %v963_v7 = vor.u32 1.1754944e-38, %v962_v63  ;;  %v919_v34 = vsel %vm918_vm7, %v1148_v35, %v915_v62  ;;  %vm1800_vm9 = vmor %vm716_vm8, %vm717_vm5  ;;  %v722_v27 = vand.u32 2147483648, %v1592_v48 }
 0x14c   :  { %v924_v11 = vsel %vm1751_vm0, %v923_v43, %v919_v34  ;;  %v885_v37 = vmul.f32 %v884_v22, %v1704_v13  ;;  %v765_v53 = vmul.f32 %v764_v47, %v1618_v9  ;;  %v719_v55 = vsel %vm1800_vm9, %v1636_v5, %v715_v57 }
 0x14d   :  { %v954_v15 = vmul.f32 %v1150_v28, %v953_v49  ;;  %vm957_vm10 = vweird.f32 %v1150_v28  ;;  %v925_v35 = vmul.f32 %v924_v11, %v900_v10  ;;  %v723_v32 = vor.u32 1.1754944e-38, %v722_v27 }
 0x14e   :  { %vm721_vm11 = vcmp.eq.f32.partialorder %v720_v29, 8.507059e+37  ;;  %v663_v24 = vmul.f32 %v1627_v56, %v1416_v18  ;;  %v621_v48 = vmul.f32 3.8918573e-05, %v1402_v0  ;;  %v581_v41 = vmul.f32 3.8918573e-05, %v1388_v50  ;;  %vm958_vm12 = vmor %vm956_vm4, %vm957_vm10 }
 0x14f   :  { %v955_v43 = vadd.f32 %v1150_v28, %v954_v15  ;;  %v1817_v13 = vmul.f32 %v980_v1, %v1578_v25  ;;  %v724_v9 = vsel %vm721_vm11, %v723_v32, %v719_v55  ;;  %v541_v26 = vmul.f32 3.8918573e-05, %v1373_v40 }
 0x150   :  { %v1127_v5 = vclamps-f32 %v925_v35, 1.0  ;;  %v1126_v10 = vclamps-f32 %v885_v37, 1.0  ;;  %v664_v52 = vadd.f32 0.014752088, %v663_v24  ;;  %v622_v60 = vadd.f32 0.001143296, %v621_v48 }
 0x151   :  { %v959_v63 = vsel %vm958_vm12, %v1150_v28, %v955_v43  ;;  %v1123_v56 = vclamps-f32 %v765_v53, 1.0  ;;  %v582_v20 = vadd.f32 0.001143296, %v581_v41  ;;  %v542_v22 = vadd.f32 0.001143296, %v541_v26 }
 0x152   :  { %v964_v21 = vsel %vm1789_vm6, %v963_v7, %v959_v63  ;;  %v725_v25 = vmul.f32 %v724_v9, %v1575_v33  ;;  %v665_v12 = vmul.f32 %v664_v52, %v1416_v18  ;;  %v623_v62 = vmul.f32 %v622_v60, %v1402_v0 }
 0x153   :  { %v965_v1 = vmul.f32 %v964_v21, %v940_v16  ;;  %v979_v19 = vadd.f32 1.0, %v1124_v45  ;;  %v583_v47 = vmul.f32 %v582_v20, %v1388_v50  ;;  %v543_v57 = vmul.f32 %v542_v22, %v1373_v40 }
 0x154   :  { %v982_v29 = vadd.f32 1.0, %v1127_v5  ;;  %v981_v28 = vadd.f32 1.0, %v1126_v10  ;;  %v666_v49 = vadd.f32 0.112945676, %v665_v12  ;;  %v624_v34 = vadd.f32 0.014752088, %v623_v62 }
 0x155   :  { %v1128_v58 = vclamps-f32 %v965_v1, 1.0  ;;  %v978_v27 = vadd.f32 1.0, %v1123_v56  ;;  %v584_v8 = vadd.f32 0.014752088, %v583_v47  ;;  %v544_v7 = vadd.f32 0.014752088, %v543_v57 }
 0x156   :  { %v1122_v11 = vclamps-f32 %v725_v25, 1.0  ;;  %v667_v33 = vmul.f32 %v666_v49, %v1416_v18  ;;  %v625_v37 = vmul.f32 %v624_v34, %v1402_v0  ;;  %v501_v16 = vmul.f32 3.8918573e-05, %v1359_v31 }
 0x157   :  { %v983_v45 = vadd.f32 1.0, %v1128_v58  ;;  %v585_v53 = vmul.f32 %v584_v8, %v1388_v50  ;;  %v545_v55 = vmul.f32 %v544_v7, %v1373_v40  ;;  %v461_v15 = vmul.f32 3.8918573e-05, %v1367_v36 }
 0x158   :  { %v998_v35 = vmul.f32 %v982_v29, %v1643_v14  ;;  %v668_v32 = vadd.f32 0.4994258, %v667_v33  ;;  %v626_v24 = vadd.f32 0.112945676, %v625_v37  ;;  %v502_v48 = vadd.f32 0.001143296, %v501_v16 }
 0x159   :  { %v999_v41 = vmul.f32 %v983_v45, %v1664_v23  ;;  %v586_v43 = vadd.f32 0.112945676, %v585_v53  ;;  %v546_v9 = vadd.f32 0.112945676, %v545_v55  ;;  %v462_v26 = vadd.f32 0.001143296, %v461_v15 }
 0x15a   :  { %v669_v5 = vmul.f32 %v668_v32, %v1416_v18  ;;  %v627_v10 = vmul.f32 %v626_v24, %v1402_v0  ;;  %v503_v52 = vmul.f32 %v502_v48, %v1359_v31  ;;  %v421_v60 = vmul.f32 3.8918573e-05, %v1357_v30 }
 0x15b   :  { %1001 = vmatpush.xpose.msra.mxu2 %v999_v41  ;;  %v1037_v63 = vmul.f32 %v999_v41, %v999_v41  ;;  %v587_v14 = vmul.f32 %v586_v43, %v1388_v50  ;;  %v547_v56 = vmul.f32 %v546_v9, %v1373_v40  ;;  %v463_v20 = vmul.f32 %v462_v26, %v1367_v36 }
 0x15c   :  { %v977_v23 = vadd.f32 1.0, %v1122_v11  ;;  %v1844_v22 = vadd.f32 1.0, %v669_v5  ;;  %v628_v21 = vadd.f32 0.4994258, %v627_v10  ;;  %v504_v25 = vadd.f32 0.014752088, %v503_v52 }
 0x15d   :  { %1038 = vmatpush.xpose.msra.mxu3 %v1037_v63  ;;  %v1847_v18 = vmul.f32 %v979_v19, %v1553_v44  ;;  %v588_v12 = vadd.f32 0.4994258, %v587_v14  ;;  %v548_v62 = vadd.f32 0.4994258, %v547_v56  ;;  %v464_v1 = vadd.f32 0.014752088, %v463_v20 }
 0x15e   :  { %v1036_v47 = vmul.f32 %v998_v35, %v998_v35  ;;  %v997_v57 = vmul.f32 %v981_v28, %v1598_v42  ;;  %v1851_v29 = vmul.f32 %v978_v27, %v1534_v6  ;;  %1151 = vrcp.f32 %v1844_v22 }
 0x15f   :  { %1002 = vmatpush.xpose.msra.mxu2 %v998_v35  ;;  %v629_v49 = vmul.f32 %v628_v21, %v1402_v0  ;;  %v589_v34 = vmul.f32 %v588_v12, %v1388_v50  ;;  %v549_v58 = vmul.f32 %v548_v62, %v1373_v40  ;;  %v505_v44 = vmul.f32 %v504_v25, %v1359_v31 }
 0x160   :  { %v1860_v19 = vmul.f32 %v1544_v51, %v1385_v46  ;;  %v1863_v42 = vmul.f32 %v977_v23, %v1521_v61  ;;  %v465_v6 = vmul.f32 %v464_v1, %v1367_v36  ;;  %v422_v28 = vadd.f32 0.001143296, %v421_v60 }
 0x161   :  { %v1868_v27 = vmul.f32 %v1548_v59, %v1405_v2  ;;  %1039 = vmatpush.xpose.msra.mxu3 %v1036_v47  ;;  %v680_v50 = vand.u32 2147483647, %v1844_v22  ;;  %v1871_v40 = vadd.f32 1.0, %v629_v49  ;;  %v1873_v0 = vadd.f32 1.0, %v589_v34 }
 0x162   :  { %v1034_v46 = vmul.f32 %v1817_v13, %v1817_v13  ;;  %v1033_v61 = vmul.f32 %v1847_v18, %v1847_v18  ;;  %v682_v51 = vand.u32 2147483648, %v1844_v22  ;;  %v1880_v8 = vadd.f32 1.0, %v549_v58 }
 0x163   :  { %1003 = vmatpush.xpose.msra.mxu2 %v997_v57  ;;  %v1035_v2 = vmul.f32 %v997_v57, %v997_v57  ;;  %v1884_v59 = vmul.f32 %v1851_v29, %v1851_v29  ;;  %1153 = vrcp.f32 %v1871_v40  ;;  %v506_v7 = vadd.f32 0.112945676, %v505_v44 }
 0x164   :  { %v1152_v11 = vpop.eup %1151  ;;  %v1889_v33 = vmul.f32 %v1863_v42, %v1863_v42  ;;  %1155 = vrcp.f32 %v1873_v0  ;;  %v466_v37 = vadd.f32 0.112945676, %v465_v6  ;;  %v423_v16 = vmul.f32 %v422_v28, %v1357_v30 }
 0x165   :  { %1040 = vmatpush.xpose.msra.mxu3 %v1035_v2  ;;  %v672_v45 = vmul.f32 %v1152_v11, %v1844_v22  ;;  %vm676_vm13 = vweird.f32 %v1844_v22  ;;  %vm1895_vm14 = vcmp.eq.f32.partialorder %v680_v50, 8.507059e+37  ;;  %v642_v55 = vand.u32 2147483648, %v1871_v40 }
 0x166   :  { %v683_v15 = vor.u32 1.1754944e-38, %v682_v51  ;;  %v640_v35 = vand.u32 2147483647, %v1871_v40  ;;  %v602_v32 = vand.u32 2147483648, %v1873_v0  ;;  %1157 = vrcp.f32 %v1880_v8 }
 0x167   :  { %1004 = vmatpush.xpose.msra.mxu2 %v1817_v13  ;;  %v673_v24 = vsub.f32 1.0, %v672_v45  ;;  %v600_v48 = vand.u32 2147483647, %v1873_v0  ;;  %v507_v41 = vmul.f32 %v506_v7, %v1359_v31  ;;  %v381_v43 = vmul.f32 3.8918573e-05, %v1409_v4 }
 0x168   :  { %vm636_vm15 = vweird.f32 %v1871_v40  ;;  %v467_v9 = vmul.f32 %v466_v37, %v1367_v36  ;;  %v424_v26 = vadd.f32 0.014752088, %v423_v16  ;;  %v341_v5 = vmul.f32 3.8918573e-05, %v1407_v3 }
 0x169   :  { %v1154_v10 = vpop.eup %1153  ;;  %1041 = vmatpush.xpose.msra.mxu3 %v1034_v46  ;;  %v674_v52 = vmul.f32 %v1152_v11, %v673_v24  ;;  %vm677_vm0 = vweird.f32 %v1152_v11  ;;  %v643_v60 = vor.u32 1.1754944e-38, %v642_v55  ;;  %vm596_vm1 = vweird.f32 %v1873_v0 }
 0x16a   :  { %v508_v13 = vadd.f32 0.4994258, %v507_v41  ;;  %v1156_v63 = vpop.eup %1155  ;;  %v632_v14 = vmul.f32 %v1154_v10, %v1871_v40  ;;  %vm1912_vm2 = vcmp.eq.f32.partialorder %v640_v35, 8.507059e+37  ;;  %v603_v20 = vor.u32 1.1754944e-38, %v602_v32  ;;  %vm678_vm5 = vmor %vm676_vm13, %vm677_vm0 }
 0x16b   :  { %v468_v23 = vadd.f32 0.4994258, %v467_v9  ;;  %v425_v21 = vmul.f32 %v424_v26, %v1357_v30  ;;  %1005 = vmatpush.xpose.msra.mxu2 %v1847_v18  ;;  %v675_v25 = vadd.f32 %v1152_v11, %v674_v52  ;;  %v592_v12 = vmul.f32 %v1156_v63, %v1873_v0 }
 0x16c   :  { %vm1919_vm3 = vcmp.eq.f32.partialorder %v600_v48, 8.507059e+37  ;;  %vm556_vm4 = vweird.f32 %v1880_v8  ;;  %v509_v1 = vmul.f32 %v508_v13, %v1359_v31  ;;  %v1158_v47 = vpop.eup %1157  ;;  %v633_v57 = vsub.f32 1.0, %v632_v14 }
 0x16d   :  { %vm637_vm6 = vweird.f32 %v1154_v10  ;;  %v560_v18 = vand.u32 2147483647, %v1880_v8  ;;  %v469_v49 = vmul.f32 %v468_v23, %v1367_v36  ;;  %1042 = vmatpush.xpose.msra.mxu3 %v1033_v61  ;;  %v679_v34 = vsel %vm678_vm5, %v1152_v11, %v675_v25  ;;  %v2085_v25 = vld [vmem:[#allocation25_spill] sm:$0xff] }
 0x16e   :  { %v593_v58 = vsub.f32 1.0, %v592_v12  ;;  %v552_v44 = vmul.f32 %v1158_v47, %v1880_v8  ;;  %v426_v6 = vadd.f32 0.112945676, %v425_v21  ;;  %v684_v31 = vsel %vm1895_vm14, %v683_v15, %v679_v34  ;;  %vm638_vm8 = vmor %vm636_vm15, %vm637_vm6 }
 0x16f   :  { %v634_v28 = vmul.f32 %v1154_v10, %v633_v57  ;;  %v1933_v50 = vadd.f32 1.0, %v509_v1  ;;  %v1935_v22 = vadd.f32 1.0, %v469_v49  ;;  %1006 = vmatpush.xpose.msra.mxu2 %v1851_v29  ;;  %v685_v46 = vmul.f32 %v684_v31, %v1868_v27 }
 0x170   :  { %v594_v51 = vmul.f32 %v1156_v63, %v593_v58  ;;  %vm597_vm7 = vweird.f32 %v1156_v63  ;;  %v553_v36 = vsub.f32 1.0, %v552_v44  ;;  %v562_v2 = vand.u32 2147483648, %v1880_v8 }
 0x171   :  { %v635_v61 = vadd.f32 %v1154_v10, %v634_v28  ;;  %1159 = vrcp.f32 %v1933_v50  ;;  %v382_v7 = vadd.f32 0.001143296, %v381_v43  ;;  %1043 = vmatpush.xpose.msra.mxu3 %v1884_v59  ;;  %v1121_v11 = vclamps-f32 %v685_v46, 1.0  ;;  %vm598_vm10 = vmor %vm596_vm1, %vm597_vm7 }
 0x172   :  { %v595_v37 = vadd.f32 %v1156_v63, %v594_v51  ;;  %v554_v29 = vmul.f32 %v1158_v47, %v553_v36  ;;  %vm557_vm9 = vweird.f32 %v1158_v47  ;;  %1161 = vrcp.f32 %v1935_v22  ;;  %v2088_v51 = vld [vmem:[#allocation24_spill] sm:$0xff] }
 0x173   :  { %v639_v27 = vsel %vm638_vm8, %v1154_v10, %v635_v61  ;;  %v427_v16 = vmul.f32 %v426_v6, %v1357_v30  ;;  %v342_v45 = vadd.f32 0.001143296, %v341_v5  ;;  %1007 = vmatpush.xpose.msra.mxu2 %v1863_v42  ;;  %v976_v59 = vadd.f32 1.0, %v1121_v11  ;;  %vm558_vm11 = vmor %vm556_vm4, %vm557_vm9 }
 0x174   :  { %v644_v53 = vsel %vm1912_vm2, %v643_v60, %v639_v27  ;;  %v599_v40 = vsel %vm598_vm10, %v1156_v63, %v595_v37  ;;  %v555_v55 = vadd.f32 %v1158_v47, %v554_v29  ;;  %vm561_vm12 = vcmp.eq.f32.partialorder %v560_v18, 8.507059e+37  ;;  %v2091_v37 = vld [vmem:[#allocation27_spill] sm:$0xff] }
 0x175   :  { %v645_v15 = vmul.f32 %v644_v53, %v1860_v19  ;;  %v604_v35 = vsel %vm1919_vm3, %v603_v20, %v599_v40  ;;  %v563_v0 = vor.u32 1.1754944e-38, %v562_v2  ;;  %1044 = vmatpush.xpose.msra.mxu3 %v1889_v33  ;;  %v992_v42 = vmul.f32 %v976_v59, %v1518_v17 }
 0x176   :  { %v605_v32 = vmul.f32 %v604_v35, %v1565_v54  ;;  %v559_v24 = vsel %vm558_vm11, %v1158_v47, %v555_v55  ;;  %v383_v48 = vmul.f32 %v382_v7, %v1409_v4  ;;  %vm516_vm13 = vweird.f32 %v1933_v50  ;;  %v2089_v7 = vld [vmem:[#allocation18_spill] sm:$0xff] }
 0x177   :  { %v1160_v41 = vpop.eup %1159  ;;  %v1120_v43 = vclamps-f32 %v645_v15, 1.0  ;;  %v564_v19 = vsel %vm561_vm12, %v563_v0, %v559_v24  ;;  %v428_v9 = vadd.f32 0.4994258, %v427_v16  ;;  %1008 = vmatpush.xpose.msra.mxu2 %v992_v42  ;;  %v1030_v8 = vmul.f32 %v992_v42, %v992_v42  ;;  %v2093_v15 = vld [vmem:[#allocation15_spill] sm:$0xff]  ;;  %v2094_v24 = vld [vmem:[#allocation16_spill] sm:$0xff] }
 0x178   :  { %v1119_v26 = vclamps-f32 %v605_v32, 1.0  ;;  %v565_v5 = vmul.f32 %v564_v19, %v1542_v39  ;;  %v512_v33 = vmul.f32 %v1160_v41, %v1933_v50  ;;  %v1162_v10 = vpop.eup %1161  ;;  %v520_v54 = vand.u32 2147483647, %v1933_v50 }
 0x179   :  { %v975_v17 = vadd.f32 1.0, %v1120_v43  ;;  %v522_v52 = vand.u32 2147483648, %v1933_v50  ;;  %v429_v60 = vmul.f32 %v428_v9, %v1357_v30  ;;  %1045 = vmatpush.xpose.msra.mxu3 %v1030_v8  ;;  %v472_v56 = vmul.f32 %v1162_v10, %v1935_v22  ;;  %v2095_v9 = vld [vmem:[#allocation23_spill] sm:$0xff] }
 0x17a   :  { %v974_v13 = vadd.f32 1.0, %v1119_v26  ;;  %v1118_v63 = vclamps-f32 %v565_v5, 1.0  ;;  %v513_v14 = vsub.f32 1.0, %v512_v33  ;;  %v482_v39 = vand.u32 2147483648, %v1935_v22 }
 0x17b   :  { %v991_v20 = vmul.f32 %v975_v17, %v1504_v38  ;;  %v1970_v23 = vadd.f32 1.0, %v429_v60  ;;  %v384_v21 = vadd.f32 0.014752088, %v383_v48  ;;  %vm517_vm14 = vweird.f32 %v1160_v41 }
 0x17c   :  { %v990_v12 = vmul.f32 %v974_v13, %v2085_v25  ;;  %v514_v62 = vmul.f32 %v1160_v41, %v513_v14  ;;  %v473_v1 = vsub.f32 1.0, %v472_v56  ;;  %v973_v47 = vadd.f32 1.0, %v1118_v63  ;;  %vm518_vm1 = vmor %vm516_vm13, %vm517_vm14  ;;  %v2096_v14 = vld [vmem:[#allocation21_spill] sm:$0xff] }
 0x17d   :  { %1009 = vmatpush.xpose.msra.mxu2 %v991_v20  ;;  %v1029_v30 = vmul.f32 %v991_v20, %v991_v20  ;;  %vm1973_vm15 = vcmp.eq.f32.partialorder %v520_v54, 8.507059e+37  ;;  %1163 = vrcp.f32 %v1970_v23  ;;  %vm477_vm0 = vweird.f32 %v1162_v10 }
 0x17e   :  { %v515_v38 = vadd.f32 %v1160_v41, %v514_v62  ;;  %v474_v18 = vmul.f32 %v1162_v10, %v473_v1  ;;  %v480_v49 = vand.u32 2147483647, %v1935_v22  ;;  %v523_v34 = vor.u32 1.1754944e-38, %v522_v52 }
 0x17f   :  { %1046 = vmatpush.xpose.msra.mxu3 %v1029_v30  ;;  %vm476_vm2 = vweird.f32 %v1935_v22  ;;  %v385_v58 = vmul.f32 %v384_v21, %v1409_v4  ;;  %v343_v44 = vmul.f32 %v342_v45, %v1407_v3  ;;  %v1028_v6 = vmul.f32 %v990_v12, %v990_v12  ;;  %v2090_v22 = vld [vmem:[#allocation26_spill] sm:$0xff]  ;;  %v2097_v30 = vld [vmem:[#allocation17_spill] sm:$0xff] }
 0x180   :  { %v519_v31 = vsel %vm518_vm1, %v1160_v41, %v515_v38  ;;  %v475_v28 = vadd.f32 %v1162_v10, %v474_v18  ;;  %v483_v46 = vor.u32 1.1754944e-38, %v482_v39  ;;  %v989_v36 = vmul.f32 %v973_v47, %v2088_v51  ;;  %vm478_vm3 = vmor %vm476_vm2, %vm477_vm0  ;;  %v2092_v45 = vld [vmem:[#allocation22_spill] sm:$0xff] }
 0x181   :  { %1010 = vmatpush.xpose.msra.mxu2 %v990_v12  ;;  %v524_v61 = vsel %vm1973_vm15, %v523_v34, %v519_v31  ;;  %v386_v50 = vadd.f32 0.112945676, %v385_v58  ;;  %v344_v2 = vadd.f32 0.014752088, %v343_v44  ;;  %v460_v11 = vmul.f32 %v2090_v22, %v2089_v7  ;;  %v2098_v51 = vld [vmem:[#allocation14_spill] sm:$0xff] }
 0x182   :  { %v525_v29 = vmul.f32 %v524_v61, %v2091_v37  ;;  %v479_v27 = vsel %vm478_vm3, %v1162_v10, %v475_v28  ;;  %vm481_vm4 = vcmp.eq.f32.partialorder %v480_v49, 8.507059e+37  ;;  %v375_v59 = vadd.f32 0.05243302, %v2092_v45 }
 0x183   :  { %v1164_v16 = vpop.eup %1163  ;;  %1047 = vmatpush.xpose.msra.mxu3 %v1028_v6  ;;  %v484_v53 = vsel %vm481_vm4, %v483_v46, %v479_v27  ;;  %v387_v40 = vmul.f32 %v386_v50, %v1409_v4  ;;  %v345_v55 = vmul.f32 %v344_v2, %v1407_v3  ;;  %v299_v35 = vmul.f32 0.5, %v2093_v15  ;;  %v2099_v15 = vld [vmem:[#allocation20_spill] sm:$0xff] }
 0x184   :  { %v1117_v0 = vclamps-f32 %v525_v29, 1.0  ;;  %v485_v42 = vmul.f32 %v484_v53, %v460_v11  ;;  %v432_v32 = vmul.f32 %v1164_v16, %v1970_v23  ;;  %v300_v48 = vmul.f32 0.5, %v2094_v24 }
 0x185   :  { %1011 = vmatpush.xpose.msra.mxu2 %v989_v36  ;;  %v1027_v41 = vmul.f32 %v989_v36, %v989_v36  ;;  %v388_v43 = vadd.f32 0.4994258, %v387_v40  ;;  %v346_v19 = vadd.f32 0.112945676, %v345_v55  ;;  %v419_v8 = vadd.f32 1.1283791, %v2095_v9 }
 0x186   :  { %v972_v26 = vadd.f32 1.0, %v1117_v0  ;;  %v1116_v5 = vclamps-f32 %v485_v42, 1.0  ;;  %v433_v33 = vsub.f32 1.0, %v432_v32  ;;  %v440_v10 = vand.u32 2147483647, %v1970_v23  ;;  %v2100_v9 = vld [vmem:[#allocation19_spill] sm:$0xff] }
 0x187   :  { %1048 = vmatpush.xpose.msra.mxu3 %v1027_v41  ;;  %v442_v17 = vand.u32 2147483648, %v1970_v23  ;;  %v389_v54 = vmul.f32 %v388_v43, %v1409_v4  ;;  %v347_v52 = vmul.f32 %v346_v19, %v1407_v3  ;;  %vm437_vm5 = vweird.f32 %v1164_v16 }
 0x188   :  { %v988_v60 = vmul.f32 %v972_v26, %v300_v48  ;;  %v971_v13 = vadd.f32 1.0, %v1116_v5  ;;  %v434_v63 = vmul.f32 %v1164_v16, %v433_v33  ;;  %v335_v56 = vadd.f32 0.05243302, %v2096_v14  ;;  %v2101_v5 = vld [vmem:[#allocation13_spill] sm:$0xff] }
 0x189   :  { %v376_v20 = vmul.f32 %v375_v59, %v1409_v4  ;;  %v390_v39 = vadd.f32 1.0, %v389_v54  ;;  %v348_v21 = vadd.f32 0.4994258, %v347_v52  ;;  %vm436_vm6 = vweird.f32 %v1970_v23 }
 0x18a   :  { %1012 = vmatpush.xpose.msra.mxu2 %v988_v60  ;;  %v1026_v25 = vmul.f32 %v988_v60, %v988_v60  ;;  %v987_v12 = vmul.f32 %v971_v13, %v299_v35  ;;  %v435_v62 = vadd.f32 %v1164_v16, %v434_v63  ;;  %vm438_vm7 = vmor %vm436_vm6, %vm437_vm5  ;;  %v443_v1 = vor.u32 1.1754944e-38, %v442_v17  ;;  %v2102_v63 = vld [vmem:[#allocation12_spill] sm:$0xff] }
 0x18b   :  { %1165 = vrcp.f32 %v390_v39  ;;  %v420_v47 = vmul.f32 %v419_v8, %v2097_v30  ;;  %vm441_vm8 = vcmp.eq.f32.partialorder %v440_v10, 8.507059e+37  ;;  %v349_v38 = vmul.f32 %v348_v21, %v1407_v3  ;;  %v1000_v21 = vld [vmem:[%s2030_s3] sm:$0x3] }
 0x18c   :  { %1049 = vmatpush.xpose.msra.mxu3 %v1026_v25  ;;  %v439_v57 = vsel %vm438_vm7, %v1164_v16, %v435_v62  ;;  %v336_v18 = vmul.f32 %v335_v56, %v1407_v3  ;;  %v377_v49 = vadd.f32 0.18741608, %v376_v20  ;;  %v1025_v58 = vmul.f32 %v987_v12, %v987_v12  ;;  %v1021_v25 = vld [vmem:[%s2031_s4] sm:$0x1] }
 0x18d   :  { %v444_v34 = vsel %vm441_vm8, %v443_v1, %v439_v57  ;;  %v350_v6 = vadd.f32 1.0, %v349_v38  ;;  %v298_v36 = vmul.f32 0.5, %v2098_v51  ;;  %v402_v37 = vand.u32 2147483648, %v390_v39 }
 0x18e   :  { %1013 = vmatpush.xpose.msra.mxu2 %v987_v12  ;;  %v445_v44 = vmul.f32 %v444_v34, %v420_v47  ;;  %v337_v28 = vadd.f32 0.18741608, %v336_v18  ;;  %v378_v46 = vmul.f32 %v377_v49, %v1409_v4  ;;  %v400_v45 = vand.u32 2147483647, %v390_v39 }
 0x18f   :  { %1167 = vrcp.f32 %v350_v6  ;;  %vm396_vm10 = vweird.f32 %v390_v39  ;;  %v403_v40 = vor.u32 1.1754944e-38, %v402_v37  ;;  %v360_v24 = vand.u32 2147483647, %v350_v6 }
 0x190   :  { %1050 = vmatpush.xpose.msra.mxu3 %v1025_v58  ;;  %v1115_v23 = vclamps-f32 %v445_v44, 1.0  ;;  %v338_v22 = vmul.f32 %v337_v28, %v1407_v3  ;;  %v379_v11 = vadd.f32 1.1283791, %v378_v46  ;;  %vm401_vm12 = vcmp.eq.f32.partialorder %v400_v45, 8.507059e+37 }
 0x191   :  { %v1166_v31 = vpop.eup %1165  ;;  %v362_v3 = vand.u32 2147483648, %v350_v6  ;;  %vm356_vm14 = vweird.f32 %v350_v6  ;;  %vm361_vm0 = vcmp.eq.f32.partialorder %v360_v24, 8.507059e+37  ;;  %v297_v33 = vmul.f32 0.5, %v2101_v5 }
 0x192   :  { %v970_v61 = vadd.f32 1.0, %v1115_v23  ;;  %v392_v50 = vmul.f32 %v1166_v31, %v390_v39  ;;  %vm397_vm9 = vweird.f32 %v1166_v31  ;;  %v339_v4 = vadd.f32 1.1283791, %v338_v22 }
 0x193   :  { %vm398_vm11 = vmor %vm396_vm10, %vm397_vm9  ;;  %v380_v35 = vmul.f32 %v379_v11, %v2099_v15  ;;  %v363_v19 = vor.u32 1.1754944e-38, %v362_v3  ;;  %v296_v14 = vmul.f32 0.5, %v2102_v63  ;;  %v1076_v23 = vstv %s2032_s5 }
 0x194   :  { %v986_v2 = vmul.f32 %v970_v61, %v298_v36  ;;  %v393_v7 = vsub.f32 1.0, %v392_v50  ;;  %v340_v8 = vmul.f32 %v339_v4, %v2100_v9 }
 0x195   :  { %v1168_v29 = vpop.eup %1167 }
 0x196   :  { %1014 = vmatpush.xpose.msra.mxu2 %v986_v2  ;;  %v1024_v27 = vmul.f32 %v986_v2, %v986_v2  ;;  %v394_v16 = vmul.f32 %v1166_v31, %v393_v7  ;;  %v352_v59 = vmul.f32 %v1168_v29, %v350_v6  ;;  %vm357_vm13 = vweird.f32 %v1168_v29 }
 0x197   :  { %vm358_vm15 = vmor %vm356_vm14, %vm357_vm13 }
 0x198   :  { %1051 = vmatpush.xpose.msra.mxu3 %v1024_v27  ;;  %v395_v53 = vadd.f32 %v1166_v31, %v394_v16  ;;  %v353_v55 = vsub.f32 1.0, %v352_v59 }
 0x19a   :  { %v399_v0 = vsel %vm398_vm11, %v1166_v31, %v395_v53  ;;  %v354_v32 = vmul.f32 %v1168_v29, %v353_v55 }
 0x19b   :  { %v404_v42 = vsel %vm401_vm12, %v403_v40, %v399_v0 }
 0x19c   :  { %v405_v48 = vmul.f32 %v404_v42, %v380_v35  ;;  %v355_v41 = vadd.f32 %v1168_v29, %v354_v32 }
 0x19e   :  { %v1114_v43 = vclamps-f32 %v405_v48, 1.0  ;;  %v359_v26 = vsel %vm358_vm15, %v1168_v29, %v355_v41 }
 0x19f   :  { %v364_v17 = vsel %vm361_vm0, %v363_v19, %v359_v26 }
 0x1a0   :  { %v969_v10 = vadd.f32 1.0, %v1114_v43  ;;  %v365_v54 = vmul.f32 %v364_v17, %v340_v8 }
 0x1a2   :  { %v985_v52 = vmul.f32 %v969_v10, %v297_v33  ;;  %v1113_v60 = vclamps-f32 %v365_v54, 1.0 }
 0x1a4   :  { %1015 = vmatpush.xpose.msra.mxu2 %v985_v52  ;;  %v1023_v13 = vmul.f32 %v985_v52, %v985_v52  ;;  %v968_v56 = vadd.f32 1.0, %v1113_v60 }
 0x1a6   :  { %1052 = vmatpush.xpose.msra.mxu3 %v1023_v13  ;;  %v984_v20 = vmul.f32 %v968_v56, %v296_v14 }
 0x1a8   :  { %1016 = vmatpush.xpose.msra.mxu2 %v984_v20  ;;  %v1022_v39 = vmul.f32 %v984_v20, %v984_v20 }
 0x1aa   :  { %1053 = vmatpush.xpose.msra.mxu3 %v1022_v39 }
 0x1ab   :  { %1017 = vmatmul.f32.vlgmr.msra.gmra.mxu2 %v1000_v21 }
 0x1ad   :  { %1054 = vmatmul.f32.vlgmr.msra.gmra.mxu3 %v1021_v25 }
 0x22e   :  { %v1018_v12 = vpop.f32.mrf.mxu2 }
 0x22f   :  { %v1058_v62 = vmul.f32 %v1018_v12, %v1018_v12 }
 0x230   :  { %v1055_v1 = vpop.f32.mrf.mxu3 }
 0x231   :  { %v1059_v30 = vsub.f32 %v1055_v1, %v1058_v62 }
 0x233   :  { %v1060_v47 = vadd.f32 1e-12, %v1059_v30 }
 0x235   :  { %1169 = vrsqrt.f32 %v1060_v47  ;;  %vm1067_vm2 = vweird.f32 %v1060_v47 }
 0x23b   :  { %v1170_v57 = vpop.eup %1169 }
 0x23c   :  { %v1062_v38 = vmul.f32 %v1170_v57, %v1060_v47  ;;  %vm1068_vm1 = vweird.f32 %v1170_v57 }
 0x23d   :  { %vm1069_vm3 = vmor %vm1067_vm2, %vm1068_vm1 }
 0x23e   :  { %v1063_v18 = vmul.f32 %v1170_v57, %v1062_v38 }
 0x240   :  { %v1064_v49 = vmul.f32 0.5, %v1063_v18 }
 0x242   :  { %v1065_v34 = vsub.f32 1.5, %v1064_v49 }
 0x244   :  { %v1066_v58 = vmul.f32 %v1170_v57, %v1065_v34 }
 0x246   :  { %v1070_v44 = vsel %vm1069_vm3, %v1170_v57, %v1066_v58 }
 0x247   :  { %v1072_v6 = vrot.slane %v1070_v44, 7 }
 0x249   :  { %v1074_v31 = vmul.f32 %v1072_v6, %v1018_v12 }
 0x24b   :  { %v1077_v28 = vadd.f32 %v1076_v23, %v1074_v31 }
 0x24d   :  { %1078 = vst [vmem:[#allocation8 - $0x1] sm:$0x2] %v1077_v28 }
 0x24e   :  { %1089 = dma.vmem_to_hbm [thread:$0]  %s1085_s15, 16, %s1087_s18, [#allocation5]  }
 0x24f   :  { %1247 = dma.done.wait [#allocation5], 16  }
 0x250   :  { %1248 = vsyncadd [#allocation5], 4294967280 }
 0x251   :  { %1094 = vsyncpa [#allocation4], 1 }
 0x252   :  { %1095 = vsyncpa [#allocation7], 1 }
 0x253   :  { %1096 = vsyncpa [#allocation5], 1 }

</bundles_post_ra>
